<compile_context>
chip_gen: v5e
topology: v5e:2x2
jax: 0.10.0
libtpu: 0.0.40
codegen_flags: <defaults>
</compile_context>

<pallas_src>
import jax
import jax.numpy as jnp
from jax.experimental import pallas as pl
from jax.experimental.pallas import tpu as pltpu

K_IN = 28 * 28   # 784
H = 512
N_OUT = 10
N_PAD = 128      # lane-dense padded logits width


def mlp_kernel(x_ref, w1_ref, b1_ref, w2_ref, b2_ref, w3_ref, b3_ref, o_ref):
    """One batch tile of the fused 3-layer MLP.

    x: (TB, 784) f32, w1: (784, 512) bf16, w2: (512, 512) bf16,
    w3: (512, 128) bf16 (zero-padded), biases f32.  Output: (TB, 128) f32.
    All matmuls are native bf16 x bf16 on the MXU with f32 accumulation;
    bias-add / ReLU are kept in f32.
    """
    # Layer 1: cast the f32 input tile to bf16 in VMEM (cheap VPU pass).
    x_bf = x_ref[...].astype(jnp.bfloat16)
    h1 = jnp.dot(x_bf, w1_ref[...], preferred_element_type=jnp.float32)
    h1 = jnp.maximum(h1 + b1_ref[...], 0.0)

    # Layer 2: bf16 activations, bf16 weights, f32 accumulate.
    h2 = jnp.dot(h1.astype(jnp.bfloat16), w2_ref[...],
                 preferred_element_type=jnp.float32)
    h2 = jnp.maximum(h2 + b2_ref[...], 0.0)

    # Layer 3 (padded to 128 output lanes -> unmasked stores).
    o_ref[...] = (
        jnp.dot(h2.astype(jnp.bfloat16), w3_ref[...],
                preferred_element_type=jnp.float32)
        + b3_ref[...]
    )


def _round_up(x, m):
    return (x + m - 1) // m * m


def _pick_batch_tile(B):
    """Batch-tile size.

    Small batches: a single block equal to the full batch dim (always a legal
    BlockSpec).  Larger batches: ~equal tiles of at most 512 rows (multiples of
    8) so the grid has >= 2 steps (v7x megacore sharding) while keeping the
    final partial block's padded-row waste minimal.
    """
    if B <= 256:
        return B
    n_tiles = max(2, pl.cdiv(B, 512))
    return _round_up(pl.cdiv(B, n_tiles), 8)


def _forward_impl(x_nchw, params):
    w1, b1, w2, b2, w3, b3 = params           # w: (in, out) f32, b: (1, out) f32
    B = x_nchw.shape[0]
    x_flat = x_nchw.reshape(B, K_IN)          # nn.Flatten(): metadata-only reshape

    TB = _pick_batch_tile(B)
    grid = (pl.cdiv(B, TB),)

    # Weights cast to bf16 once (halves weight HBM traffic); W3/b3 zero-padded
    # to a lane-dense 128-wide layer 3.
    w1_b = w1.astype(jnp.bfloat16)
    w2_b = w2.astype(jnp.bfloat16)
    w3_b = jnp.zeros((H, N_PAD), jnp.bfloat16).at[:, :N_OUT].set(
        w3.astype(jnp.bfloat16))
    b3_p = jnp.zeros((1, N_PAD), jnp.float32).at[:, :N_OUT].set(b3)

    rows = grid[0] * TB
    flops = 2 * rows * (K_IN * H + H * H + H * N_PAD)
    bytes_accessed = (
        B * K_IN * 4 + w1_b.size * 2 + w2_b.size * 2 + w3_b.size * 2
        + b1.size * 4 + b2.size * 4 + b3_p.size * 4 + B * N_PAD * 4
    )
    cost = pl.CostEstimate(flops=flops, transcendentals=0,
                           bytes_accessed=bytes_accessed)

    const = lambda i: (0, 0)  # weights/biases: same block every step -> resident

    out_pad = pl.pallas_call(
        mlp_kernel,
        out_shape=jax.ShapeDtypeStruct((B, N_PAD), jnp.float32),
        grid=grid,
        in_specs=[
            pl.BlockSpec((TB, K_IN), lambda i: (i, 0)),   # x tile (f32, unpadded)
            pl.BlockSpec((K_IN, H), const),               # W1 bf16 (VMEM-resident)
            pl.BlockSpec((1, H), const),                  # b1
            pl.BlockSpec((H, H), const),                  # W2 bf16
            pl.BlockSpec((1, H), const),                  # b2
            pl.BlockSpec((H, N_PAD), const),              # W3 bf16 (padded to 128)
            pl.BlockSpec((1, N_PAD), const),              # b3 (padded to 128)
        ],
        out_specs=pl.BlockSpec((TB, N_PAD), lambda i: (i, 0)),
        compiler_params=pltpu.CompilerParams(
            dimension_semantics=("parallel",)),
        cost_estimate=cost,
    )(x_flat, w1_b, b1, w2_b, b2, w3_b, b3_p)

    return out_pad[:, :N_OUT]


neural_network_forward = jax.jit(_forward_impl)


def init_params(key):
    """PyTorch-Linear-style uniform(-1/sqrt(fan_in), 1/sqrt(fan_in)) init.

    Weights stored as (in_features, out_features) so the kernel computes
    y = x @ W + b, matching PyTorch's y = x @ W_pt.T + b.
    """
    dims = [(K_IN, H), (H, H), (H, N_OUT)]
    params = []
    for fan_in, fan_out in dims:
        kw, kb, key = jax.random.split(key, 3)
        bound = 1.0 / jnp.sqrt(jnp.float32(fan_in))
        w = jax.random.uniform(kw, (fan_in, fan_out), jnp.float32,
                               minval=-bound, maxval=bound)
        b = jax.random.uniform(kb, (1, fan_out), jnp.float32,
                               minval=-bound, maxval=bound)
        params += [w, b]
    return tuple(params)


if __name__ == "__main__":
    key = jax.random.PRNGKey(0)
    k_x, k_p = jax.random.split(key)

    # Small batch of synthetic "FashionMNIST-like" images, NCHW like PyTorch.
    B = 2
    x = jax.random.uniform(k_x, (B, 1, 28, 28), jnp.float32)
    params = init_params(k_p)

    logits = neural_network_forward(x, params)
    jax.block_until_ready(logits)

    # Reference: same math in plain JAX, with the same bf16 rounding of inputs,
    # weights and inter-layer activations that the kernel applies.
    w1, b1, w2, b2, w3, b3 = params
    f32 = jnp.float32
    xf = x.reshape(B, -1)
    w1r = w1.astype(jnp.bfloat16)
    w2r = w2.astype(jnp.bfloat16)
    w3r = w3.astype(jnp.bfloat16)
    h1 = jnp.maximum(
        jnp.dot(xf.astype(jnp.bfloat16), w1r, preferred_element_type=f32) + b1,
        0.0)
    h2 = jnp.maximum(
        jnp.dot(h1.astype(jnp.bfloat16), w2r, preferred_element_type=f32) + b2,
        0.0)
    ref = jnp.dot(h2.astype(jnp.bfloat16), w3r, preferred_element_type=f32) + b3

    assert logits.shape == (B, N_OUT)
    assert jnp.allclose(logits, ref, atol=5e-3, rtol=5e-3), (
        float(jnp.max(jnp.abs(logits - ref))))

    print("KERNEL_OK")
</pallas_src>

<mosaic_0001>
module attributes {stable_mosaic.version = 11 : i64} {
  func.func @mlp_kernel(%arg0: i32, %arg1: memref<2x784xf32, #tpu.memory_space<vmem>>, %arg2: memref<784x512xbf16, #tpu.memory_space<vmem>>, %arg3: memref<1x512xf32, #tpu.memory_space<vmem>>, %arg4: memref<512x512xbf16, #tpu.memory_space<vmem>>, %arg5: memref<1x512xf32, #tpu.memory_space<vmem>>, %arg6: memref<512x128xbf16, #tpu.memory_space<vmem>>, %arg7: memref<1x128xf32, #tpu.memory_space<vmem>>, %arg8: memref<2x128xf32, #tpu.memory_space<vmem>>) attributes {dimension_semantics = [#tpu.dimension_semantics<parallel>], iteration_bounds = array<i64: 1>, scalar_prefetch = 0 : i64, scratch_operands = 0 : i64, tpu.core_type = #tpu.core_type<tc>, window_params = [{transform_indices = @transform_0, window_bounds = array<i64: 2, 784>}, {pipeline_mode = #tpu.pipeline_mode<synchronous>, transform_indices = @transform_1, window_bounds = array<i64: 784, 512>}, {pipeline_mode = #tpu.pipeline_mode<synchronous>, transform_indices = @transform_2, window_bounds = array<i64: 1, 512>}, {pipeline_mode = #tpu.pipeline_mode<synchronous>, transform_indices = @transform_3, window_bounds = array<i64: 512, 512>}, {pipeline_mode = #tpu.pipeline_mode<synchronous>, transform_indices = @transform_4, window_bounds = array<i64: 1, 512>}, {pipeline_mode = #tpu.pipeline_mode<synchronous>, transform_indices = @transform_5, window_bounds = array<i64: 512, 128>}, {pipeline_mode = #tpu.pipeline_mode<synchronous>, transform_indices = @transform_6, window_bounds = array<i64: 1, 128>}, {transform_indices = @transform_7, window_bounds = array<i64: 2, 128>}]} {
    %c0 = arith.constant 0 : index
    %c0_0 = arith.constant 0 : index
    %0 = vector.load %arg1[%c0, %c0_0] : memref<2x784xf32, #tpu.memory_space<vmem>>, vector<2x784xf32>
    %1 = arith.truncf %0 : vector<2x784xf32> to vector<2x784xbf16>
    %c0_1 = arith.constant 0 : index
    %c0_2 = arith.constant 0 : index
    %2 = vector.load %arg2[%c0_1, %c0_2] : memref<784x512xbf16, #tpu.memory_space<vmem>>, vector<784x512xbf16>
    %cst = arith.constant dense<0.000000e+00> : vector<2x512xf32>
    %3 = tpu.matmul %1, %2, %cst {dimension_numbers = #tpu.dot_dimension_numbers<[1], [0], [0], [1], [0, 0, 1, 1], [], []>} : vector<2x784xbf16>, vector<784x512xbf16>, vector<2x512xf32> -> vector<2x512xf32>
    %c0_3 = arith.constant 0 : index
    %c0_4 = arith.constant 0 : index
    %4 = vector.load %arg3[%c0_3, %c0_4] : memref<1x512xf32, #tpu.memory_space<vmem>>, vector<1x512xf32>
    %5 = vector.broadcast %4 : vector<1x512xf32> to vector<2x512xf32>
    %6 = arith.addf %3, %5 : vector<2x512xf32>
    %cst_5 = arith.constant 0.000000e+00 : f32
    %7 = vector.broadcast %cst_5 : f32 to vector<2x512xf32>
    %8 = arith.maximumf %6, %7 : vector<2x512xf32>
    %9 = arith.truncf %8 : vector<2x512xf32> to vector<2x512xbf16>
    %c0_6 = arith.constant 0 : index
    %c0_7 = arith.constant 0 : index
    %10 = vector.load %arg4[%c0_6, %c0_7] : memref<512x512xbf16, #tpu.memory_space<vmem>>, vector<512x512xbf16>
    %cst_8 = arith.constant dense<0.000000e+00> : vector<2x512xf32>
    %11 = tpu.matmul %9, %10, %cst_8 {dimension_numbers = #tpu.dot_dimension_numbers<[1], [0], [0], [1], [0, 0, 1, 1], [], []>} : vector<2x512xbf16>, vector<512x512xbf16>, vector<2x512xf32> -> vector<2x512xf32>
    %c0_9 = arith.constant 0 : index
    %c0_10 = arith.constant 0 : index
    %12 = vector.load %arg5[%c0_9, %c0_10] : memref<1x512xf32, #tpu.memory_space<vmem>>, vector<1x512xf32>
    %13 = vector.broadcast %12 : vector<1x512xf32> to vector<2x512xf32>
    %14 = arith.addf %11, %13 : vector<2x512xf32>
    %cst_11 = arith.constant 0.000000e+00 : f32
    %15 = vector.broadcast %cst_11 : f32 to vector<2x512xf32>
    %16 = arith.maximumf %14, %15 : vector<2x512xf32>
    %17 = arith.truncf %16 : vector<2x512xf32> to vector<2x512xbf16>
    %c0_12 = arith.constant 0 : index
    %c0_13 = arith.constant 0 : index
    %18 = vector.load %arg6[%c0_12, %c0_13] : memref<512x128xbf16, #tpu.memory_space<vmem>>, vector<512x128xbf16>
    %cst_14 = arith.constant dense<0.000000e+00> : vector<2x128xf32>
    %19 = tpu.matmul %17, %18, %cst_14 {dimension_numbers = #tpu.dot_dimension_numbers<[1], [0], [0], [1], [0, 0, 1, 1], [], []>} : vector<2x512xbf16>, vector<512x128xbf16>, vector<2x128xf32> -> vector<2x128xf32>
    %c0_15 = arith.constant 0 : index
    %c0_16 = arith.constant 0 : index
    %20 = vector.load %arg7[%c0_15, %c0_16] : memref<1x128xf32, #tpu.memory_space<vmem>>, vector<1x128xf32>
    %21 = vector.broadcast %20 : vector<1x128xf32> to vector<2x128xf32>
    %22 = arith.addf %19, %21 : vector<2x128xf32>
    %c0_17 = arith.constant 0 : index
    %c0_18 = arith.constant 0 : index
    %23 = vector.load %arg8[%c0_17, %c0_18] : memref<2x128xf32, #tpu.memory_space<vmem>>, vector<2x128xf32>
    tpu.vector_store %arg8[%c0_17, %c0_18], %22 {strides = array<i32>} : memref<2x128xf32, #tpu.memory_space<vmem>>, vector<2x128xf32>,
    return
  }
  func.func @transform_0(%arg0: i32) -> (i32, i32) {
    %c0_i32 = arith.constant 0 : i32
    %c0_i32_0 = arith.constant 0 : i32
    return %arg0, %c0_i32 : i32, i32
  }
  func.func @transform_1(%arg0: i32) -> (i32, i32) {
    %c0_i32 = arith.constant 0 : i32
    %c0_i32_0 = arith.constant 0 : i32
    %c0_i32_1 = arith.constant 0 : i32
    return %c0_i32, %c0_i32_0 : i32, i32
  }
  func.func @transform_2(%arg0: i32) -> (i32, i32) {
    %c0_i32 = arith.constant 0 : i32
    %c0_i32_0 = arith.constant 0 : i32
    %c0_i32_1 = arith.constant 0 : i32
    return %c0_i32, %c0_i32_0 : i32, i32
  }
  func.func @transform_3(%arg0: i32) -> (i32, i32) {
    %c0_i32 = arith.constant 0 : i32
    %c0_i32_0 = arith.constant 0 : i32
    %c0_i32_1 = arith.constant 0 : i32
    return %c0_i32, %c0_i32_0 : i32, i32
  }
  func.func @transform_4(%arg0: i32) -> (i32, i32) {
    %c0_i32 = arith.constant 0 : i32
    %c0_i32_0 = arith.constant 0 : i32
    %c0_i32_1 = arith.constant 0 : i32
    return %c0_i32, %c0_i32_0 : i32, i32
  }
  func.func @transform_5(%arg0: i32) -> (i32, i32) {
    %c0_i32 = arith.constant 0 : i32
    %c0_i32_0 = arith.constant 0 : i32
    %c0_i32_1 = arith.constant 0 : i32
    return %c0_i32, %c0_i32_0 : i32, i32
  }
  func.func @transform_6(%arg0: i32) -> (i32, i32) {
    %c0_i32 = arith.constant 0 : i32
    %c0_i32_0 = arith.constant 0 : i32
    %c0_i32_1 = arith.constant 0 : i32
    return %c0_i32, %c0_i32_0 : i32, i32
  }
  func.func @transform_7(%arg0: i32) -> (i32, i32) {
    %c0_i32 = arith.constant 0 : i32
    %c0_i32_0 = arith.constant 0 : i32
    return %arg0, %c0_i32 : i32, i32
  }
}

</mosaic_0001>

<bundles_post_ra>
// kernel: _forward_impl.1
= control target key start
LH: loop header
LB: loop body
LE: loop exit
PB: predicated region body
PF: predicated region fallthrough
CT: control target
= control target key end

     0   :  { %vm1242_vm0 = vcmask 130048   ;;  %s6982_s0 = inlined_call_operand.vmem [shape: f32[2,784], index: 0, kind: input, shape index: {}]   ;;  %s6983_s1 = inlined_call_operand.vmem [shape: bf16[784,512], index: 1, kind: input, shape index: {}]   ;;  %s6984_s2 = inlined_call_operand.vmem [shape: f32[1,512], index: 2, kind: input, shape index: {}]   ;;  %s6985_s3 = inlined_call_operand.vmem [shape: bf16[512,512], index: 3, kind: input, shape index: {}]   ;;  %s6986_s4 = inlined_call_operand.vmem [shape: f32[1,512], index: 4, kind: input, shape index: {}]   ;;  %s6987_s5 = inlined_call_operand.vmem [shape: bf16[512,128], index: 5, kind: input, shape index: {}]   ;;  %s6988_s6 = inlined_call_operand.vmem [shape: f32[1,128], index: 6, kind: input, shape index: {}]   ;;  %s6989_s7 = inlined_call_operand.hbm [shape: f32[2,128], index: 7, kind: output, shape index: {}]  }
   0x1   :  { %v3055_v0 = vld [vmem:[%s6983_s1 + $0xe0] sm:$0xf]  ;;  %v4399_v1 = vld [vmem:[%s6983_s1 + $0xec] sm:$0xf0] }
   0x2   :  { %v3183_v2 = vld [vmem:[%s6983_s1 + $0x1e0] sm:$0xf]  ;;  %v3056_v3 = vor.u32 %v4399_v1, %v3055_v0  ;;  %v4431_v4 = vld [vmem:[%s6983_s1 + $0x1ec] sm:$0xf0] }
   0x3   :  { %v3311_v5 = vld [vmem:[%s6983_s1 + $0x2e0] sm:$0xf]  ;;  %v4463_v6 = vld [vmem:[%s6983_s1 + $0x2ec] sm:$0xf0]  ;;  %v3184_v7 = vor.u32 %v4431_v4, %v3183_v2 }
   0x4   :  { %v3312_v8 = vor.u32 %v4463_v6, %v3311_v5  ;;  %v3439_v9 = vld [vmem:[%s6983_s1 + $0x3e0] sm:$0xf]  ;;  %v4495_v10 = vld [vmem:[%s6983_s1 + $0x3ec] sm:$0xf0]  ;;  %1246 = vmatpush.bf16.msra.mxu0 %v3056_v3 }
   0x5   :  { %v3039_v11 = vld [vmem:[%s6983_s1 + $0xc0] sm:$0xf]  ;;  %v3440_v12 = vor.u32 %v4495_v10, %v3439_v9  ;;  %v4395_v13 = vld [vmem:[%s6983_s1 + $0xcc] sm:$0xf0]  ;;  %1259 = vmatpush.bf16.msra.mxu1 %v3184_v7 }
   0x6   :  { %v3167_v14 = vld [vmem:[%s6983_s1 + $0x1c0] sm:$0xf]  ;;  %v4427_v15 = vld [vmem:[%s6983_s1 + $0x1cc] sm:$0xf0]  ;;  %1272 = vmatpush.bf16.msra.mxu2 %v3312_v8  ;;  %v3040_v16 = vor.u32 %v4395_v13, %v3039_v11 }
   0x7   :  { %v3168_v17 = vor.u32 %v4427_v15, %v3167_v14  ;;  %v3295_v18 = vld [vmem:[%s6983_s1 + $0x2c0] sm:$0xf]  ;;  %v4459_v19 = vld [vmem:[%s6983_s1 + $0x2cc] sm:$0xf0]  ;;  %1285 = vmatpush.bf16.msra.mxu3 %v3440_v12 }
   0x8   :  { %v3423_v20 = vld [vmem:[%s6983_s1 + $0x3c0] sm:$0xf]  ;;  %v3296_v21 = vor.u32 %v4459_v19, %v3295_v18  ;;  %v4491_v22 = vld [vmem:[%s6983_s1 + $0x3cc] sm:$0xf0]  ;;  %1247 = vmatpush.bf16.msra.mxu0 %v3040_v16 }
   0x9   :  { %v3023_v23 = vld [vmem:[%s6983_s1 + $0xa0] sm:$0xf]  ;;  %v4391_v24 = vld [vmem:[%s6983_s1 + $0xac] sm:$0xf0]  ;;  %v3424_v25 = vor.u32 %v4491_v22, %v3423_v20  ;;  %1260 = vmatpush.bf16.msra.mxu1 %v3168_v17 }
   0xa   :  { %v3151_v26 = vld [vmem:[%s6983_s1 + $0x1a0] sm:$0xf]  ;;  %v4423_v27 = vld [vmem:[%s6983_s1 + $0x1ac] sm:$0xf0]  ;;  %v3024_v29 = vor.u32 %v4391_v24, %v3023_v23  ;;  %1273 = vmatpush.bf16.msra.mxu2 %v3296_v21 }
   0xb   :  { %v3279_v28 = vld [vmem:[%s6983_s1 + $0x2a0] sm:$0xf]  ;;  %v4455_v30 = vld [vmem:[%s6983_s1 + $0x2ac] sm:$0xf0]  ;;  %v3152_v33 = vor.u32 %v4423_v27, %v3151_v26  ;;  %1286 = vmatpush.bf16.msra.mxu3 %v3424_v25 }
   0xc   :  { %v3407_v31 = vld [vmem:[%s6983_s1 + $0x3a0] sm:$0xf]  ;;  %v4487_v32 = vld [vmem:[%s6983_s1 + $0x3ac] sm:$0xf0]  ;;  %v3280_v34 = vor.u32 %v4455_v30, %v3279_v28  ;;  %1248 = vmatpush.bf16.msra.mxu0 %v3024_v29 }
   0xd   :  { %v3007_v35 = vld [vmem:[%s6983_s1 + $0x80] sm:$0xf]  ;;  %v4387_v36 = vld [vmem:[%s6983_s1 + $0x8c] sm:$0xf0]  ;;  %v3408_v38 = vor.u32 %v4487_v32, %v3407_v31  ;;  %1261 = vmatpush.bf16.msra.mxu1 %v3152_v33 }
   0xe   :  { %v3135_v37 = vld [vmem:[%s6983_s1 + $0x180] sm:$0xf]  ;;  %v4419_v39 = vld [vmem:[%s6983_s1 + $0x18c] sm:$0xf0]  ;;  %v3008_v44 = vor.u32 %v4387_v36, %v3007_v35  ;;  %1274 = vmatpush.bf16.msra.mxu2 %v3280_v34  ;;  %v4397_v34 = vld [vmem:[%s6983_s1 + $0xe4] sm:$0xf] }
   0xf   :  { %v3263_v40 = vld [vmem:[%s6983_s1 + $0x280] sm:$0xf]  ;;  %v4451_v41 = vld [vmem:[%s6983_s1 + $0x28c] sm:$0xf0]  ;;  %v3136_v45 = vor.u32 %v4419_v39, %v3135_v37  ;;  %1287 = vmatpush.bf16.msra.mxu3 %v3408_v38  ;;  %v3057_v35 = vld [vmem:[%s6983_s1 + $0xf0] sm:$0xf0] }
  0x10   :  { %v3391_v42 = vld [vmem:[%s6983_s1 + $0x380] sm:$0xf]  ;;  %v4483_v43 = vld [vmem:[%s6983_s1 + $0x38c] sm:$0xf0]  ;;  %v3264_v46 = vor.u32 %v4451_v41, %v3263_v40  ;;  %1249 = vmatpush.bf16.msra.mxu0 %v3008_v44  ;;  %v4429_v40 = vld [vmem:[%s6983_s1 + $0x1e4] sm:$0xf] }
  0x11   :  { %v2991_v47 = vld [vmem:[%s6983_s1 + $0x60] sm:$0xf]  ;;  %v4383_v48 = vld [vmem:[%s6983_s1 + $0x6c] sm:$0xf0]  ;;  %v3392_v50 = vor.u32 %v4483_v43, %v3391_v42  ;;  %1262 = vmatpush.bf16.msra.mxu1 %v3136_v45  ;;  %v3185_v41 = vld [vmem:[%s6983_s1 + $0x1f0] sm:$0xf0] }
  0x12   :  { %v3119_v49 = vld [vmem:[%s6983_s1 + $0x160] sm:$0xf]  ;;  %v4415_v51 = vld [vmem:[%s6983_s1 + $0x16c] sm:$0xf0]  ;;  %v2992_v56 = vor.u32 %v4383_v48, %v2991_v47  ;;  %1275 = vmatpush.bf16.msra.mxu2 %v3264_v46  ;;  %v3060_v48 = vor.u32 %v4397_v34, %v3057_v35 }
  0x13   :  { %v3247_v52 = vld [vmem:[%s6983_s1 + $0x260] sm:$0xf]  ;;  %v4447_v53 = vld [vmem:[%s6983_s1 + $0x26c] sm:$0xf0]  ;;  %v3120_v57 = vor.u32 %v4415_v51, %v3119_v49  ;;  %1288 = vmatpush.bf16.msra.mxu3 %v3392_v50  ;;  %v4393_v50 = vld [vmem:[%s6983_s1 + $0xc4] sm:$0xf] }
  0x14   :  { %v3375_v54 = vld [vmem:[%s6983_s1 + $0x360] sm:$0xf]  ;;  %v4479_v55 = vld [vmem:[%s6983_s1 + $0x36c] sm:$0xf0]  ;;  %v3248_v58 = vor.u32 %v4447_v53, %v3247_v52  ;;  %1250 = vmatpush.bf16.msra.mxu0 %v2992_v56  ;;  %v3041_v51 = vld [vmem:[%s6983_s1 + $0xd0] sm:$0xf0] }
  0x15   :  { %v2975_v59 = vld [vmem:[%s6983_s1 + $0x40] sm:$0xf]  ;;  %v4379_v60 = vld [vmem:[%s6983_s1 + $0x4c] sm:$0xf0]  ;;  %v3376_v62 = vor.u32 %v4479_v55, %v3375_v54  ;;  %1263 = vmatpush.bf16.msra.mxu1 %v3120_v57 }
  0x16   :  { %v3103_v61 = vld [vmem:[%s6983_s1 + $0x140] sm:$0xf]  ;;  %v4411_v63 = vld [vmem:[%s6983_s1 + $0x14c] sm:$0xf0]  ;;  %v2976_v4 = vor.u32 %v4379_v60, %v2975_v59  ;;  %1276 = vmatpush.bf16.msra.mxu2 %v3248_v58  ;;  %v3188_v59 = vor.u32 %v4429_v40, %v3185_v41 }
  0x17   :  { %v3231_v0 = vld [vmem:[%s6983_s1 + $0x240] sm:$0xf]  ;;  %v4443_v1 = vld [vmem:[%s6983_s1 + $0x24c] sm:$0xf0]  ;;  %v3104_v6 = vor.u32 %v4411_v63, %v3103_v61  ;;  %1289 = vmatpush.bf16.msra.mxu3 %v3376_v62  ;;  %v4425_v61 = vld [vmem:[%s6983_s1 + $0x1c4] sm:$0xf] }
  0x18   :  { %v3359_v2 = vld [vmem:[%s6983_s1 + $0x340] sm:$0xf]  ;;  %v4475_v3 = vld [vmem:[%s6983_s1 + $0x34c] sm:$0xf0]  ;;  %v3232_v7 = vor.u32 %v4443_v1, %v3231_v0  ;;  %1251 = vmatpush.bf16.msra.mxu0 %v2976_v4  ;;  %v3169_v62 = vld [vmem:[%s6983_s1 + $0x1d0] sm:$0xf0]  ;;  %v3044_v1 = vor.u32 %v4393_v50, %v3041_v51 }
  0x19   :  { %v2959_v5 = vld [vmem:[%s6983_s1 + $0x20] sm:$0xf]  ;;  %v4375_v8 = vld [vmem:[%s6983_s1 + $0x2c] sm:$0xf0]  ;;  %v3360_v11 = vor.u32 %v4475_v3, %v3359_v2  ;;  %1264 = vmatpush.bf16.msra.mxu1 %v3104_v6  ;;  %v4389_v6 = vld [vmem:[%s6983_s1 + $0xa4] sm:$0xf] }
  0x1a   :  { %v3087_v9 = vld [vmem:[%s6983_s1 + $0x120] sm:$0xf]  ;;  %v4407_v10 = vld [vmem:[%s6983_s1 + $0x12c] sm:$0xf0]  ;;  %v2960_v18 = vor.u32 %v4375_v8, %v2959_v5  ;;  %1277 = vmatpush.bf16.msra.mxu2 %v3232_v7  ;;  %v3025_v7 = vld [vmem:[%s6983_s1 + $0xb0] sm:$0xf0] }
  0x1b   :  { %v3215_v12 = vld [vmem:[%s6983_s1 + $0x220] sm:$0xf]  ;;  %v4439_v13 = vld [vmem:[%s6983_s1 + $0x22c] sm:$0xf0]  ;;  %v3088_v22 = vor.u32 %v4407_v10, %v3087_v9  ;;  %1290 = vmatpush.bf16.msra.mxu3 %v3360_v11  ;;  %v3172_v9 = vor.u32 %v4425_v61, %v3169_v62  ;;  %v4421_v11 = vld [vmem:[%s6983_s1 + $0x1a4] sm:$0xf] }
  0x1c   :  { %v3343_v14 = vld [vmem:[%s6983_s1 + $0x320] sm:$0xf]  ;;  %v4471_v15 = vld [vmem:[%s6983_s1 + $0x32c] sm:$0xf0]  ;;  %v3216_v23 = vor.u32 %v4439_v13, %v3215_v12  ;;  %1252 = vmatpush.bf16.msra.mxu0 %v2960_v18  ;;  %v3153_v12 = vld [vmem:[%s6983_s1 + $0x1b0] sm:$0xf0] }
  0x1d   :  { %v2943_v16 = vld [vmem:[%s6983_s1] sm:$0xf]  ;;  %v4371_v17 = vld [vmem:[%s6983_s1 + $0xc] sm:$0xf0]  ;;  %v3344_v26 = vor.u32 %v4471_v15, %v3343_v14  ;;  %1265 = vmatpush.bf16.msra.mxu1 %v3088_v22  ;;  %v3028_v14 = vor.u32 %v4389_v6, %v3025_v7  ;;  %v3156_v22 = vor.u32 %v4421_v11, %v3153_v12  ;;  %v4405_v62 = vld [vmem:[%s6983_s1 + $0x124] sm:$0xf] }
  0x1e   :  { %v3071_v19 = vld [vmem:[%s6983_s1 + $0x100] sm:$0xf]  ;;  %v4403_v20 = vld [vmem:[%s6983_s1 + $0x10c] sm:$0xf0]  ;;  %v2944_v33 = vor.u32 %v4371_v17, %v2943_v16  ;;  %1278 = vmatpush.bf16.msra.mxu2 %v3216_v23  ;;  %v2945_v11 = vld [vmem:[%s6983_s1 + $0x10] sm:$0xf0] }
  0x1f   :  { %v28_v21 = vld [vmem:[%s6982_s0] sm:$0xff]  ;;  %v4435_v25 = vld [vmem:[%s6983_s1 + $0x20c] sm:$0xf0]  ;;  %v3072_v37 = vor.u32 %v4403_v20, %v3071_v19  ;;  %1291 = vmatpush.bf16.msra.mxu3 %v3344_v26  ;;  %v3009_v20 = vld [vmem:[%s6983_s1 + $0x90] sm:$0xf0] }
  0x20   :  { %v3199_v24 = vld [vmem:[%s6983_s1 + $0x200] sm:$0xf]  ;;  %32 = vst [vmem:[#allocation1] ss:$4 sm:$0xff] %v28_v21  ;;  %v4467_v28 = vld [vmem:[%s6983_s1 + $0x30c] sm:$0xf0]  ;;  %1253 = vmatpush.bf16.msra.mxu0 %v2944_v33 }
  0x21   :  { %v3327_v27 = vld [vmem:[%s6983_s1 + $0x300] sm:$0xf]  ;;  %v4527_v30 = vld [vmem:[%s6983_s1 + $0x4ec] sm:$0xf0]  ;;  %v3200_v38 = vor.u32 %v4435_v25, %v3199_v24  ;;  %1266 = vmatpush.bf16.msra.mxu1 %v3072_v37  ;;  %v4385_v19 = vld [vmem:[%s6983_s1 + $0x84] sm:$0xf] }
  0x22   :  { %v3567_v29 = vld [vmem:[%s6983_s1 + $0x4e0] sm:$0xf]  ;;  %v4559_v32 = vld [vmem:[%s6983_s1 + $0x5ec] sm:$0xf0]  ;;  %v3328_v42 = vor.u32 %v4467_v28, %v3327_v27  ;;  %v4417_v21 = vld [vmem:[%s6983_s1 + $0x184] sm:$0xf]  ;;  %v3012_v28 = vor.u32 %v4385_v19, %v3009_v20 }
  0x23   :  { %v3695_v31 = vld [vmem:[%s6983_s1 + $0x5e0] sm:$0xf]  ;;  %v4563_v39 = vld [vmem:[%s6983_s1 + $0x60c] sm:$0xf0]  ;;  %v3568_v43 = vor.u32 %v4527_v30, %v3567_v29  ;;  %1279 = vmatpush.bf16.msra.mxu2 %v3200_v38  ;;  %v3137_v24 = vld [vmem:[%s6983_s1 + $0x190] sm:$0xf0] }
  0x24   :  { %v3711_v36 = vld [vmem:[%s6983_s1 + $0x600] sm:$0xf]  ;;  %v4523_v45 = vld [vmem:[%s6983_s1 + $0x4cc] sm:$0xf0]  ;;  %v3696_v47 = vor.u32 %v4559_v32, %v3695_v31  ;;  %1292 = vmatpush.bf16.msra.mxu3 %v3328_v42  ;;  %v29_v31 = vld [vmem:[%s6982_s0 + $0x8] sm:$0x3f]  ;;  %v3140_v34 = vor.u32 %v4417_v21, %v3137_v24 }
  0x25   :  { %v3551_v44 = vld [vmem:[%s6983_s1 + $0x4c0] sm:$0xf]  ;;  %v4555_v49 = vld [vmem:[%s6983_s1 + $0x5cc] sm:$0xf0]  ;;  %v3712_v55 = vor.u32 %v4563_v39, %v3711_v36  ;;  %1298 = vmatpush.bf16.msrb.mxu0 %v3568_v43  ;;  %v4381_v32 = vld [vmem:[%s6983_s1 + $0x64] sm:$0xf] }
  0x26   :  { %v3679_v46 = vld [vmem:[%s6983_s1 + $0x5c0] sm:$0xf]  ;;  %v3552_v60 = vor.u32 %v4523_v45, %v3551_v44  ;;  %1311 = vmatpush.bf16.msrb.mxu1 %v3696_v47  ;;  %v4519_v3 = vld [vmem:[%s6983_s1 + $0x4ac] sm:$0xf0]  ;;  %v2993_v33 = vld [vmem:[%s6983_s1 + $0x70] sm:$0xf0] }
  0x27   :  { %v37_v52 = vld.sshfl [vmem:[#allocation1 + $0x10] sm:$0xff pattern:$0x73625140]  ;;  %v35_v53 = vld.sshfl [vmem:[#allocation1] sm:$0xff pattern:$0x73625140]  ;;  %v3680_v0 = vor.u32 %v4555_v49, %v3679_v46  ;;  %1331 = vmatpush.bf16.msrb.mxu2 %v3712_v55  ;;  %v2996_v39 = vor.u32 %v4381_v32, %v2993_v33 }
  0x28   :  { %v5037_v54 = vpack.c.bf16 %v37_v52, %v37_v52  ;;  %v5039_v56 = vpack.c.bf16 %v35_v53, %v35_v53  ;;  %v38_v57 = vld.sshfl [vmem:[#allocation1 + $0x18] sm:$0xff pattern:$0x73625140]  ;;  %v36_v58 = vld.sshfl [vmem:[#allocation1 + $0x8] sm:$0xff pattern:$0x73625140]  ;;  %1337 = vmatpush.bf16.msrb.mxu3 %v3060_v48 }
  0x29   :  { %v5047_v63 = vpack.c.bf16 %v38_v57, %v38_v57  ;;  %v3535_v2 = vld [vmem:[%s6983_s1 + $0x4a0] sm:$0xf]  ;;  %v4551_v5 = vld [vmem:[%s6983_s1 + $0x5ac] sm:$0xf0]  ;;  %v5069_v8 = vpack.c.bf16 %v36_v58, %v36_v58  ;;  %1299 = vmatpush.bf16.msrb.mxu0 %v3552_v60  ;;  %34 = vst [vmem:[#allocation1 + $0x20] ss:$4 sm:$0xff] %v29_v31 }
  0x2a   :  { %v3663_v4 = vld [vmem:[%s6983_s1 + $0x5a0] sm:$0xf]  ;;  %1280 = vmatmul.bf16.vlgmr.msra.gmra.mxu2 %v5037_v54  ;;  %1254 = vmatmul.bf16.vlgmr.msra.gmra.mxu0 %v5039_v56  ;;  %v3536_v10 = vor.u32 %v4519_v3, %v3535_v2  ;;  %v4515_v16 = vld [vmem:[%s6983_s1 + $0x48c] sm:$0xf0]  ;;  %v4413_v36 = vld [vmem:[%s6983_s1 + $0x164] sm:$0xf] }
  0x2b   :  { %1293 = vmatmul.bf16.vlgmr.msra.gmra.mxu3 %v5047_v63  ;;  %1350 = vmatpush.bf16.msra.mxu2 %v3188_v59  ;;  %v3664_v13 = vor.u32 %v4551_v5, %v3663_v4  ;;  %v3519_v15 = vld [vmem:[%s6983_s1 + $0x480] sm:$0xf]  ;;  %v4547_v18 = vld [vmem:[%s6983_s1 + $0x58c] sm:$0xf0]  ;;  %v3121_v37 = vld [vmem:[%s6983_s1 + $0x170] sm:$0xf0] }
  0x2c   :  { %1312 = vmatpush.bf16.msrb.mxu1 %v3680_v0  ;;  %1338 = vmatpush.bf16.msrb.mxu3 %v3044_v1  ;;  %v3647_v17 = vld [vmem:[%s6983_s1 + $0x580] sm:$0xf]  ;;  %v3520_v23 = vor.u32 %v4515_v16, %v3519_v15  ;;  %v4511_v26 = vld [vmem:[%s6983_s1 + $0x46c] sm:$0xf0]  ;;  %v4377_v44 = vld [vmem:[%s6983_s1 + $0x44] sm:$0xf]  ;;  %v3124_v47 = vor.u32 %v4413_v36, %v3121_v37 }
  0x2d   :  { %1267 = vmatmul.bf16.vlgmr.msra.gmra.mxu1 %v5069_v8  ;;  %1300 = vmatpush.bf16.msrb.mxu0 %v3536_v10  ;;  %v3503_v25 = vld [vmem:[%s6983_s1 + $0x460] sm:$0xf]  ;;  %v3648_v27 = vor.u32 %v4547_v18, %v3647_v17  ;;  %v4543_v30 = vld [vmem:[%s6983_s1 + $0x56c] sm:$0xf0]  ;;  %v2977_v45 = vld [vmem:[%s6983_s1 + $0x50] sm:$0xf0] }
  0x2e   :  { %v3631_v29 = vld [vmem:[%s6983_s1 + $0x560] sm:$0xf]  ;;  %v3504_v35 = vor.u32 %v4511_v26, %v3503_v25  ;;  %v4507_v41 = vld [vmem:[%s6983_s1 + $0x44c] sm:$0xf0]  ;;  %v4409_v46 = vld [vmem:[%s6983_s1 + $0x144] sm:$0xf]  ;;  %v2980_v53 = vor.u32 %v4377_v44, %v2977_v45 }
  0x2f   :  { %1351 = vmatpush.bf16.msra.mxu2 %v3172_v9  ;;  %v3632_v38 = vor.u32 %v4543_v30, %v3631_v29  ;;  %v3487_v40 = vld [vmem:[%s6983_s1 + $0x440] sm:$0xf]  ;;  %v4539_v43 = vld [vmem:[%s6983_s1 + $0x54c] sm:$0xf0]  ;;  %v3105_v49 = vld [vmem:[%s6983_s1 + $0x150] sm:$0xf0] }
  0x30   :  { %1313 = vmatpush.bf16.msrb.mxu1 %v3664_v13  ;;  %1339 = vmatpush.bf16.msrb.mxu3 %v3028_v14  ;;  %v3615_v42 = vld [vmem:[%s6983_s1 + $0x540] sm:$0xf]  ;;  %v3488_v48 = vor.u32 %v4507_v41, %v3487_v40  ;;  %v4503_v51 = vld [vmem:[%s6983_s1 + $0x42c] sm:$0xf0]  ;;  %v4373_v59 = vld [vmem:[%s6983_s1 + $0x24] sm:$0xf]  ;;  %v3108_v1 = vor.u32 %v4409_v46, %v3105_v49 }
  0x31   :  { %1301 = vmatpush.bf16.msrb.mxu0 %v3520_v23  ;;  %v3471_v50 = vld [vmem:[%s6983_s1 + $0x420] sm:$0xf]  ;;  %v3616_v52 = vor.u32 %v4539_v43, %v3615_v42  ;;  %v41_v57 = vld.sshfl [vmem:[#allocation1 + $0x30] sm:$0xff pattern:$0x73625140] }
  0x32   :  { %v3599_v55 = vld [vmem:[%s6983_s1 + $0x520] sm:$0xf]  ;;  %v4535_v58 = vld [vmem:[%s6983_s1 + $0x52c] sm:$0xf0]  ;;  %v2961_v60 = vld [vmem:[%s6983_s1 + $0x30] sm:$0xf0]  ;;  %v5172_v61 = vpack.c.bf16 %v41_v57, %v41_v57  ;;  %v3472_v2 = vor.u32 %v4503_v51, %v3471_v50 }
  0x33   :  { %1352 = vmatpush.bf16.msra.mxu2 %v3156_v22  ;;  %v3089_v0 = vld [vmem:[%s6983_s1 + $0x130] sm:$0xf0]  ;;  %v3455_v3 = vld [vmem:[%s6983_s1 + $0x400] sm:$0xf]  ;;  %v4499_v4 = vld [vmem:[%s6983_s1 + $0x40c] sm:$0xf0]  ;;  %v3600_v6 = vor.u32 %v4535_v58, %v3599_v55  ;;  %v2964_v7 = vor.u32 %v4373_v59, %v2961_v60 }
  0x34   :  { %1314 = vmatpush.bf16.msrb.mxu1 %v3648_v27  ;;  %1340 = vmatpush.bf16.msrb.mxu3 %v3012_v28  ;;  %v3583_v5 = vld [vmem:[%s6983_s1 + $0x500] sm:$0xf]  ;;  %v4531_v9 = vld [vmem:[%s6983_s1 + $0x50c] sm:$0xf0]  ;;  %v4369_v10 = vld [vmem:[%s6983_s1 + $0x4] sm:$0xf]  ;;  %v3092_v18 = vor.u32 %v4405_v62, %v3089_v0  ;;  %v3456_v19 = vor.u32 %v4499_v4, %v3455_v3 }
  0x35   :  { %1302 = vmatpush.bf16.msrb.mxu0 %v3504_v35  ;;  %v4461_v12 = vld [vmem:[%s6983_s1 + $0x2e4] sm:$0xf]  ;;  %v3313_v13 = vld [vmem:[%s6983_s1 + $0x2f0] sm:$0xf0]  ;;  %v3584_v22 = vor.u32 %v4531_v9, %v3583_v5  ;;  %v2948_v23 = vor.u32 %v4369_v10, %v2945_v11 }
  0x36   :  { %v4493_v14 = vld [vmem:[%s6983_s1 + $0x3e4] sm:$0xf]  ;;  %v3441_v15 = vld [vmem:[%s6983_s1 + $0x3f0] sm:$0xf0]  ;;  %v3316_v26 = vor.u32 %v4461_v12, %v3313_v13 }
  0x37   :  { %1353 = vmatpush.bf16.msra.mxu2 %v3140_v34  ;;  %v4525_v16 = vld [vmem:[%s6983_s1 + $0x4e4] sm:$0xf]  ;;  %v3569_v17 = vld [vmem:[%s6983_s1 + $0x4f0] sm:$0xf0]  ;;  %v3444_v27 = vor.u32 %v4493_v14, %v3441_v15 }
  0x38   :  { %1315 = vmatpush.bf16.msrb.mxu1 %v3632_v38  ;;  %1341 = vmatpush.bf16.msrb.mxu3 %v2996_v39  ;;  %v39_v20 = vld.sshfl [vmem:[#allocation1 + $0x20] sm:$0xff pattern:$0x73625140]  ;;  %v3073_v24 = vld [vmem:[%s6983_s1 + $0x110] sm:$0xf0]  ;;  %v3572_v31 = vor.u32 %v4525_v16, %v3569_v17 }
  0x39   :  { %1303 = vmatpush.bf16.msrb.mxu0 %v3488_v48  ;;  %v4401_v21 = vld [vmem:[%s6983_s1 + $0x104] sm:$0xf]  ;;  %v40_v25 = vld.sshfl [vmem:[#allocation1 + $0x28] sm:$0xff pattern:$0x73625140]  ;;  %v5233_v32 = vpack.c.bf16 %v39_v20, %v39_v20 }
  0x3a   :  { %3725 = vmatmul.msk.bf16.vlgmr.msrb.gmra.mxu2 %vm1242_vm0, %v5172_v61  ;;  %v4557_v28 = vld [vmem:[%s6983_s1 + $0x5e4] sm:$0xf]  ;;  %v3697_v29 = vld [vmem:[%s6983_s1 + $0x5f0] sm:$0xf0]  ;;  %v3076_v36 = vor.u32 %v4401_v21, %v3073_v24  ;;  %v5244_v37 = vpack.c.bf16 %v40_v25, %v40_v25 }
  0x3b   :  { %1354 = vmatpush.bf16.msra.mxu2 %v3124_v47  ;;  %v4457_v30 = vld [vmem:[%s6983_s1 + $0x2c4] sm:$0xf]  ;;  %v3297_v33 = vld [vmem:[%s6983_s1 + $0x2d0] sm:$0xf0]  ;;  %v3700_v40 = vor.u32 %v4557_v28, %v3697_v29 }
  0x3c   :  { %1316 = vmatpush.bf16.msrb.mxu1 %v3616_v52  ;;  %1342 = vmatpush.bf16.msrb.mxu3 %v2980_v53  ;;  %v4489_v34 = vld [vmem:[%s6983_s1 + $0x3c4] sm:$0xf]  ;;  %v3425_v35 = vld [vmem:[%s6983_s1 + $0x3d0] sm:$0xf0]  ;;  %v3300_v41 = vor.u32 %v4457_v30, %v3297_v33 }
  0x3d   :  { %1304 = vmatpush.bf16.msrb.mxu0 %v3472_v2  ;;  %v4521_v38 = vld [vmem:[%s6983_s1 + $0x4c4] sm:$0xf]  ;;  %v3553_v39 = vld [vmem:[%s6983_s1 + $0x4d0] sm:$0xf0]  ;;  %v3428_v42 = vor.u32 %v4489_v34, %v3425_v35 }
  0x3e   :  { %v4553_v43 = vld [vmem:[%s6983_s1 + $0x5c4] sm:$0xf]  ;;  %v3681_v44 = vld [vmem:[%s6983_s1 + $0x5d0] sm:$0xf0]  ;;  %v3556_v46 = vor.u32 %v4521_v38, %v3553_v39 }
  0x3f   :  { %1355 = vmatpush.bf16.msra.mxu2 %v3108_v1  ;;  %v4453_v45 = vld [vmem:[%s6983_s1 + $0x2a4] sm:$0xf]  ;;  %v3281_v47 = vld [vmem:[%s6983_s1 + $0x2b0] sm:$0xf0]  ;;  %v3684_v52 = vor.u32 %v4553_v43, %v3681_v44 }
  0x40   :  { %1317 = vmatpush.bf16.msrb.mxu1 %v3600_v6  ;;  %1343 = vmatpush.bf16.msrb.mxu3 %v2964_v7  ;;  %v4485_v48 = vld [vmem:[%s6983_s1 + $0x3a4] sm:$0xf]  ;;  %v3409_v49 = vld [vmem:[%s6983_s1 + $0x3b0] sm:$0xf0]  ;;  %v3284_v53 = vor.u32 %v4453_v45, %v3281_v47 }
  0x41   :  { %1305 = vmatpush.bf16.msrb.mxu0 %v3456_v19  ;;  %v4517_v50 = vld [vmem:[%s6983_s1 + $0x4a4] sm:$0xf]  ;;  %v3537_v51 = vld [vmem:[%s6983_s1 + $0x4b0] sm:$0xf0]  ;;  %v3412_v55 = vor.u32 %v4485_v48, %v3409_v49 }
  0x42   :  { %v4549_v57 = vld [vmem:[%s6983_s1 + $0x5a4] sm:$0xf]  ;;  %v3665_v58 = vld [vmem:[%s6983_s1 + $0x5b0] sm:$0xf0]  ;;  %v3540_v60 = vor.u32 %v4517_v50, %v3537_v51 }
  0x43   :  { %1356 = vmatpush.bf16.msra.mxu2 %v3092_v18  ;;  %v4449_v59 = vld [vmem:[%s6983_s1 + $0x284] sm:$0xf]  ;;  %v3265_v62 = vld [vmem:[%s6983_s1 + $0x290] sm:$0xf0]  ;;  %v3668_v4 = vor.u32 %v4549_v57, %v3665_v58  ;;  %v3063_v57 = vld [vmem:[%s6983_s1 + $0xe8] sm:$0xf] }
  0x44   :  { %1318 = vmatpush.bf16.msrb.mxu1 %v3584_v22  ;;  %1344 = vmatpush.bf16.msrb.mxu3 %v2948_v23  ;;  %v4481_v0 = vld [vmem:[%s6983_s1 + $0x384] sm:$0xf]  ;;  %v3393_v1 = vld [vmem:[%s6983_s1 + $0x390] sm:$0xf0]  ;;  %v3268_v5 = vor.u32 %v4449_v59, %v3265_v62  ;;  %v4400_v58 = vld [vmem:[%s6983_s1 + $0xf4] sm:$0xf0] }
  0x45   :  { %1363 = vmatpush.bf16.msra.mxu0 %v3316_v26  ;;  %v4513_v2 = vld [vmem:[%s6983_s1 + $0x484] sm:$0xf]  ;;  %v3521_v3 = vld [vmem:[%s6983_s1 + $0x490] sm:$0xf0]  ;;  %v3396_v6 = vor.u32 %v4481_v0, %v3393_v1  ;;  %v3319_v0 = vld [vmem:[%s6983_s1 + $0x2e8] sm:$0xf] }
  0x46   :  { %1306 = vmatmul.bf16.vlgmr.msrb.gmra.mxu0 %v5233_v32  ;;  %v4545_v7 = vld [vmem:[%s6983_s1 + $0x584] sm:$0xf]  ;;  %v3649_v9 = vld [vmem:[%s6983_s1 + $0x590] sm:$0xf0]  ;;  %v3524_v11 = vor.u32 %v4513_v2, %v3521_v3  ;;  %v4464_v1 = vld [vmem:[%s6983_s1 + $0x2f4] sm:$0xf0] }
  0x47   :  { %1357 = vmatpush.bf16.msra.mxu2 %v3076_v36  ;;  %1319 = vmatmul.bf16.vlgmr.msrb.gmra.mxu1 %v5244_v37  ;;  %v4445_v10 = vld [vmem:[%s6983_s1 + $0x264] sm:$0xf]  ;;  %v3249_v12 = vld [vmem:[%s6983_s1 + $0x270] sm:$0xf0]  ;;  %v3652_v17 = vor.u32 %v4545_v7, %v3649_v9  ;;  %v3064_v7 = vor.u32 %v4400_v58, %v3063_v57  ;;  %v3447_v9 = vld [vmem:[%s6983_s1 + $0x3e8] sm:$0xf] }
  0x48   :  { %1376 = vmatpush.bf16.msra.mxu1 %v3444_v27  ;;  %1389 = vmatpush.bf16.msra.mxu3 %v3572_v31  ;;  %v4477_v13 = vld [vmem:[%s6983_s1 + $0x364] sm:$0xf]  ;;  %v3377_v14 = vld [vmem:[%s6983_s1 + $0x370] sm:$0xf0]  ;;  %v3252_v18 = vor.u32 %v4445_v10, %v3249_v12  ;;  %v4496_v10 = vld [vmem:[%s6983_s1 + $0x3f4] sm:$0xf0] }
  0x49   :  { %1345 = vmatmul.bf16.vlgmr.msrb.gmra.mxu3 %v5039_v56  ;;  %1364 = vmatpush.bf16.msra.mxu0 %v3300_v41  ;;  %v4509_v15 = vld [vmem:[%s6983_s1 + $0x464] sm:$0xf]  ;;  %v3505_v16 = vld [vmem:[%s6983_s1 + $0x470] sm:$0xf0]  ;;  %v3380_v19 = vor.u32 %v4477_v13, %v3377_v14  ;;  %v3191_v12 = vld [vmem:[%s6983_s1 + $0x1e8] sm:$0xf]  ;;  %v3320_v14 = vor.u32 %v4464_v1, %v3319_v0 }
  0x4a   :  { %1358 = vmatmul.bf16.vlgmr.msra.gmra.mxu2 %v5069_v8  ;;  %v4541_v20 = vld [vmem:[%s6983_s1 + $0x564] sm:$0xf]  ;;  %v3633_v21 = vld [vmem:[%s6983_s1 + $0x570] sm:$0xf0]  ;;  %v3508_v23 = vor.u32 %v4509_v15, %v3505_v16  ;;  %v4432_v13 = vld [vmem:[%s6983_s1 + $0x1f4] sm:$0xf0] }
  0x4b   :  { %1402 = vmatpush.bf16.msrb.mxu2 %v3700_v40  ;;  %v4441_v22 = vld [vmem:[%s6983_s1 + $0x244] sm:$0xf]  ;;  %v3233_v24 = vld [vmem:[%s6983_s1 + $0x250] sm:$0xf0]  ;;  %v3636_v29 = vor.u32 %v4541_v20, %v3633_v21  ;;  %v3047_v16 = vld [vmem:[%s6983_s1 + $0xc8] sm:$0xf]  ;;  %v3192_v21 = vor.u32 %v4432_v13, %v3191_v12 }
  0x4c   :  { %1377 = vmatpush.bf16.msra.mxu1 %v3428_v42  ;;  %1390 = vmatpush.bf16.msra.mxu3 %v3556_v46  ;;  %v4473_v25 = vld [vmem:[%s6983_s1 + $0x344] sm:$0xf]  ;;  %v3361_v26 = vld [vmem:[%s6983_s1 + $0x350] sm:$0xf0]  ;;  %v3236_v30 = vor.u32 %v4441_v22, %v3233_v24  ;;  %v4460_v20 = vld [vmem:[%s6983_s1 + $0x2d4] sm:$0xf0] }
  0x4d   :  { %1365 = vmatpush.bf16.msra.mxu0 %v3284_v53  ;;  %v4505_v27 = vld [vmem:[%s6983_s1 + $0x444] sm:$0xf]  ;;  %v3489_v28 = vld [vmem:[%s6983_s1 + $0x450] sm:$0xf0]  ;;  %v3364_v31 = vor.u32 %v4473_v25, %v3361_v26  ;;  %v3431_v22 = vld [vmem:[%s6983_s1 + $0x3c8] sm:$0xf] }
  0x4e   :  { %v4537_v33 = vld [vmem:[%s6983_s1 + $0x544] sm:$0xf]  ;;  %v3617_v34 = vld [vmem:[%s6983_s1 + $0x550] sm:$0xf0]  ;;  %v3492_v36 = vor.u32 %v4505_v27, %v3489_v28  ;;  %v3175_v25 = vld [vmem:[%s6983_s1 + $0x1c8] sm:$0xf] }
  0x4f   :  { %1403 = vmatpush.bf16.msrb.mxu2 %v3684_v52  ;;  %v4437_v35 = vld [vmem:[%s6983_s1 + $0x224] sm:$0xf]  ;;  %v3217_v38 = vld [vmem:[%s6983_s1 + $0x230] sm:$0xf0]  ;;  %v3620_v43 = vor.u32 %v4537_v33, %v3617_v34  ;;  %v4428_v26 = vld [vmem:[%s6983_s1 + $0x1d4] sm:$0xf0] }
  0x50   :  { %1378 = vmatpush.bf16.msra.mxu1 %v3412_v55  ;;  %1391 = vmatpush.bf16.msra.mxu3 %v3540_v60  ;;  %v4469_v39 = vld [vmem:[%s6983_s1 + $0x324] sm:$0xf]  ;;  %v3345_v40 = vld [vmem:[%s6983_s1 + $0x330] sm:$0xf0]  ;;  %v3220_v46 = vor.u32 %v4437_v35, %v3217_v38  ;;  %v3031_v28 = vld [vmem:[%s6983_s1 + $0xa8] sm:$0xf]  ;;  %v3176_v34 = vor.u32 %v4428_v26, %v3175_v25 }
  0x51   :  { %1366 = vmatpush.bf16.msra.mxu0 %v3268_v5  ;;  %v4501_v41 = vld [vmem:[%s6983_s1 + $0x424] sm:$0xf]  ;;  %v3473_v42 = vld [vmem:[%s6983_s1 + $0x430] sm:$0xf0]  ;;  %v3348_v47 = vor.u32 %v4469_v39, %v3345_v40  ;;  %v4456_v33 = vld [vmem:[%s6983_s1 + $0x2b4] sm:$0xf0] }
  0x52   :  { %v4533_v44 = vld [vmem:[%s6983_s1 + $0x524] sm:$0xf]  ;;  %v3601_v45 = vld [vmem:[%s6983_s1 + $0x530] sm:$0xf0]  ;;  %v3476_v51 = vor.u32 %v4501_v41, %v3473_v42  ;;  %v3415_v35 = vld [vmem:[%s6983_s1 + $0x3a8] sm:$0xf] }
  0x53   :  { %1404 = vmatpush.bf16.msrb.mxu2 %v3668_v4  ;;  %v4433_v48 = vld [vmem:[%s6983_s1 + $0x204] sm:$0xf]  ;;  %v3201_v49 = vld [vmem:[%s6983_s1 + $0x210] sm:$0xf0]  ;;  %v3604_v60 = vor.u32 %v4533_v44, %v3601_v45  ;;  %v3159_v39 = vld [vmem:[%s6983_s1 + $0x1a8] sm:$0xf] }
  0x54   :  { %1379 = vmatpush.bf16.msra.mxu1 %v3396_v6  ;;  %1392 = vmatpush.bf16.msra.mxu3 %v3524_v11  ;;  %v4465_v50 = vld [vmem:[%s6983_s1 + $0x304] sm:$0xf]  ;;  %v3329_v52 = vld [vmem:[%s6983_s1 + $0x310] sm:$0xf0]  ;;  %v3204_v2 = vor.u32 %v4433_v48, %v3201_v49  ;;  %v4424_v40 = vld [vmem:[%s6983_s1 + $0x1b4] sm:$0xf0] }
  0x55   :  { %1367 = vmatpush.bf16.msra.mxu0 %v3252_v18  ;;  %v4497_v53 = vld [vmem:[%s6983_s1 + $0x404] sm:$0xf]  ;;  %v3457_v55 = vld [vmem:[%s6983_s1 + $0x410] sm:$0xf0]  ;;  %v3332_v3 = vor.u32 %v4465_v50, %v3329_v52  ;;  %v3448_v18 = vor.u32 %v4496_v10, %v3447_v9  ;;  %v3015_v42 = vld [vmem:[%s6983_s1 + $0x88] sm:$0xf] }
  0x56   :  { %v4561_v59 = vld [vmem:[%s6983_s1 + $0x604] sm:$0xf]  ;;  %v3713_v62 = vld [vmem:[%s6983_s1 + $0x610] sm:$0xf0]  ;;  %v3460_v6 = vor.u32 %v4497_v53, %v3457_v55  ;;  %v3271_v45 = vld [vmem:[%s6983_s1 + $0x288] sm:$0xf] }
  0x57   :  { %1405 = vmatpush.bf16.msrb.mxu2 %v3652_v17  ;;  %v4529_v4 = vld [vmem:[%s6983_s1 + $0x504] sm:$0xf]  ;;  %v3585_v5 = vld [vmem:[%s6983_s1 + $0x510] sm:$0xf0]  ;;  %v3716_v11 = vor.u32 %v4561_v59, %v3713_v62  ;;  %v4396_v17 = vld [vmem:[%s6983_s1 + $0xd4] sm:$0xf0] }
  0x58   :  { %1380 = vmatpush.bf16.msra.mxu1 %v3380_v19  ;;  %1393 = vmatpush.bf16.msra.mxu3 %v3508_v23  ;;  %v3588_v15 = vor.u32 %v4529_v4, %v3585_v5  ;;  %v3303_v19 = vld [vmem:[%s6983_s1 + $0x2c8] sm:$0xf]  ;;  %v4492_v23 = vld [vmem:[%s6983_s1 + $0x3d4] sm:$0xf0]  ;;  %v3048_v24 = vor.u32 %v4396_v17, %v3047_v16 }
  0x59   :  { %1368 = vmatpush.bf16.msra.mxu0 %v3236_v30  ;;  %v3304_v27 = vor.u32 %v4460_v20, %v3303_v19  ;;  %v3432_v30 = vor.u32 %v4492_v23, %v3431_v22  ;;  %v3399_v48 = vld [vmem:[%s6983_s1 + $0x388] sm:$0xf]  ;;  %v4484_v49 = vld [vmem:[%s6983_s1 + $0x394] sm:$0xf0] }
  0x5a   :  { %v4420_v52 = vld [vmem:[%s6983_s1 + $0x194] sm:$0xf0] }
  0x5b   :  { %1406 = vmatpush.bf16.msrb.mxu2 %v3636_v29  ;;  %v4392_v29 = vld [vmem:[%s6983_s1 + $0xb4] sm:$0xf0] }
  0x5c   :  { %1381 = vmatpush.bf16.msra.mxu1 %v3364_v31  ;;  %1394 = vmatpush.bf16.msra.mxu3 %v3492_v36  ;;  %v3287_v31 = vld [vmem:[%s6983_s1 + $0x2a8] sm:$0xf]  ;;  %v4488_v36 = vld [vmem:[%s6983_s1 + $0x3b4] sm:$0xf0]  ;;  %v3032_v38 = vor.u32 %v4392_v29, %v3031_v28 }
  0x5d   :  { %1369 = vmatpush.bf16.msra.mxu0 %v3220_v46  ;;  %v3288_v41 = vor.u32 %v4456_v33, %v3287_v31  ;;  %v3416_v44 = vor.u32 %v4488_v36, %v3415_v35  ;;  %v4452_v46 = vld [vmem:[%s6983_s1 + $0x294] sm:$0xf0] }
  0x5f   :  { %1407 = vmatpush.bf16.msrb.mxu2 %v3620_v43  ;;  %v4388_v43 = vld [vmem:[%s6983_s1 + $0x94] sm:$0xf0] }
  0x60   :  { %1382 = vmatpush.bf16.msra.mxu1 %v3348_v47  ;;  %1395 = vmatpush.bf16.msra.mxu3 %v3476_v51  ;;  %v3160_v47 = vor.u32 %v4424_v40, %v3159_v39  ;;  %v3016_v50 = vor.u32 %v4388_v43, %v3015_v42  ;;  %v3143_v51 = vld [vmem:[%s6983_s1 + $0x188] sm:$0xf] }
  0x61   :  { %1370 = vmatpush.bf16.msra.mxu0 %v3204_v2 }
  0x63   :  { %1408 = vmatpush.bf16.msrb.mxu2 %v3604_v60 }
  0x64   :  { %1383 = vmatpush.bf16.msra.mxu1 %v3332_v3  ;;  %1396 = vmatpush.bf16.msra.mxu3 %v3460_v6 }
  0x65   :  { %1454 = vmatpush.bf16.msrb.mxu0 %v3320_v14 }
  0x66   :  { %1371 = vmatmul.bf16.vlgmr.msra.gmra.mxu0 %v5037_v54 }
  0x67   :  { %1409 = vmatpush.bf16.msrb.mxu2 %v3588_v15  ;;  %1397 = vmatmul.bf16.vlgmr.msra.gmra.mxu3 %v5233_v32 }
  0x68   :  { %1428 = vmatpush.bf16.msrb.mxu1 %v3064_v7  ;;  %1422 = vmatpush.bf16.msrb.mxu3 %v3716_v11 }
  0x69   :  { %1384 = vmatmul.bf16.vlgmr.msra.gmra.mxu1 %v5047_v63  ;;  %1455 = vmatpush.bf16.msrb.mxu0 %v3304_v27 }
  0x6a   :  { %1410 = vmatmul.bf16.vlgmr.msrb.gmra.mxu2 %v5244_v37 }
  0x6b   :  { %1467 = vmatpush.bf16.msra.mxu2 %v3448_v18 }
  0x6c   :  { %1441 = vmatpush.bf16.msra.mxu3 %v3192_v21  ;;  %1429 = vmatpush.bf16.msrb.mxu1 %v3048_v24 }
  0x6f   :  { %1468 = vmatpush.bf16.msra.mxu2 %v3432_v30 }
  0x70   :  { %1442 = vmatpush.bf16.msra.mxu3 %v3176_v34  ;;  %1430 = vmatpush.bf16.msrb.mxu1 %v3032_v38 }
  0x71   :  { %12 = vsyncpa [#allocation3], 0  ;;  %1456 = vmatpush.bf16.msrb.mxu0 %v3288_v41  ;;  %v3272_v53 = vor.u32 %v4452_v46, %v3271_v45  ;;  %v2999_v55 = vld [vmem:[%s6983_s1 + $0x68] sm:$0xf]  ;;  %v4384_v57 = vld [vmem:[%s6983_s1 + $0x74] sm:$0xf0]  ;;  %v3400_v58 = vor.u32 %v4484_v49, %v3399_v48  ;;  %v3144_v62 = vor.u32 %v4420_v52, %v3143_v51 }
  0x72   :  { %v3255_v59 = vld [vmem:[%s6983_s1 + $0x268] sm:$0xf]  ;;  %v4448_v60 = vld [vmem:[%s6983_s1 + $0x274] sm:$0xf0]  ;;  %v3000_v2 = vor.u32 %v4384_v57, %v2999_v55  ;;  %v4398_v48 = vld [vmem:[%s6983_s1 + $0xec] sm:$0xf] }
  0x73   :  { %1469 = vmatpush.bf16.msra.mxu2 %v3416_v44  ;;  %v3383_v0 = vld [vmem:[%s6983_s1 + $0x368] sm:$0xf]  ;;  %v4480_v1 = vld [vmem:[%s6983_s1 + $0x374] sm:$0xf0]  ;;  %v3256_v5 = vor.u32 %v4448_v60, %v3255_v59  ;;  %v3065_v49 = vld [vmem:[%s6983_s1 + $0xf8] sm:$0xf0] }
  0x74   :  { %1443 = vmatpush.bf16.msra.mxu3 %v3160_v47  ;;  %1431 = vmatpush.bf16.msrb.mxu1 %v3016_v50  ;;  %v3127_v3 = vld [vmem:[%s6983_s1 + $0x168] sm:$0xf]  ;;  %v4416_v4 = vld [vmem:[%s6983_s1 + $0x174] sm:$0xf0]  ;;  %v3384_v9 = vor.u32 %v4480_v1, %v3383_v0  ;;  %v4430_v60 = vld [vmem:[%s6983_s1 + $0x1ec] sm:$0xf]  ;;  %v3068_v1 = vor.u32 %v4398_v48, %v3065_v49 }
  0x75   :  { %1457 = vmatpush.bf16.msrb.mxu0 %v3272_v53  ;;  %v2983_v6 = vld [vmem:[%s6983_s1 + $0x48] sm:$0xf]  ;;  %v4380_v7 = vld [vmem:[%s6983_s1 + $0x54] sm:$0xf0]  ;;  %v3128_v12 = vor.u32 %v4416_v4, %v3127_v3  ;;  %v4394_v3 = vld [vmem:[%s6983_s1 + $0xcc] sm:$0xf] }
  0x76   :  { %v3239_v10 = vld [vmem:[%s6983_s1 + $0x248] sm:$0xf]  ;;  %v4444_v11 = vld [vmem:[%s6983_s1 + $0x254] sm:$0xf0]  ;;  %v2984_v15 = vor.u32 %v4380_v7, %v2983_v6  ;;  %v3049_v4 = vld [vmem:[%s6983_s1 + $0xd8] sm:$0xf0] }
  0x77   :  { %1470 = vmatpush.bf16.msra.mxu2 %v3400_v58  ;;  %v3367_v13 = vld [vmem:[%s6983_s1 + $0x348] sm:$0xf]  ;;  %v4476_v14 = vld [vmem:[%s6983_s1 + $0x354] sm:$0xf0]  ;;  %v3240_v18 = vor.u32 %v4444_v11, %v3239_v10  ;;  %3726 = vmatmul.msk.bf16.vlgmr.msrb.gmra.mxu3 %vm1242_vm0, %v5172_v61  ;;  %s4753_s8 = smov [#allocation2]   ;;  %s2932_s11 = sshll.u32 %s6989_s7, 4  ;;  %s2933_s11 = int_to_ptr.hbm [resolvable:$true] %s2932_s11 }
  0x78   :  { %1444 = vmatpush.bf16.msra.mxu3 %v3144_v62  ;;  %1432 = vmatpush.bf16.msrb.mxu1 %v3000_v2  ;;  %v3111_v16 = vld [vmem:[%s6983_s1 + $0x148] sm:$0xf]  ;;  %v4412_v17 = vld [vmem:[%s6983_s1 + $0x154] sm:$0xf0]  ;;  %v3368_v21 = vor.u32 %v4476_v14, %v3367_v13  ;;  %v3193_v62 = vld [vmem:[%s6983_s1 + $0x1f8] sm:$0xf0]  ;;  %v3052_v14 = vor.u32 %v4394_v3, %v3049_v4 }
  0x79   :  { %1458 = vmatpush.bf16.msrb.mxu0 %v3256_v5  ;;  %v2967_v19 = vld [vmem:[%s6983_s1 + $0x28] sm:$0xf]  ;;  %v4376_v20 = vld [vmem:[%s6983_s1 + $0x34] sm:$0xf0]  ;;  %v3112_v24 = vor.u32 %v4412_v17, %v3111_v16  ;;  %v3196_v6 = vor.u32 %v4430_v60, %v3193_v62  ;;  %v3177_v13 = vld [vmem:[%s6983_s1 + $0x1d8] sm:$0xf0] }
  0x7a   :  { %v3223_v22 = vld [vmem:[%s6983_s1 + $0x228] sm:$0xf]  ;;  %v4440_v23 = vld [vmem:[%s6983_s1 + $0x234] sm:$0xf0]  ;;  %v2968_v27 = vor.u32 %v4376_v20, %v2967_v19  ;;  %v4390_v16 = vld [vmem:[%s6983_s1 + $0xac] sm:$0xf] }
  0x7b   :  { %1471 = vmatpush.bf16.msra.mxu2 %v3384_v9  ;;  %v3351_v25 = vld [vmem:[%s6983_s1 + $0x328] sm:$0xf]  ;;  %v4472_v26 = vld [vmem:[%s6983_s1 + $0x334] sm:$0xf0]  ;;  %v3224_v31 = vor.u32 %v4440_v23, %v3223_v22  ;;  %v3033_v17 = vld [vmem:[%s6983_s1 + $0xb8] sm:$0xf0] }
  0x7c   :  { %1445 = vmatpush.bf16.msra.mxu3 %v3128_v12  ;;  %1433 = vmatpush.bf16.msrb.mxu1 %v2984_v15  ;;  %v3095_v28 = vld [vmem:[%s6983_s1 + $0x128] sm:$0xf]  ;;  %v4408_v29 = vld [vmem:[%s6983_s1 + $0x134] sm:$0xf0]  ;;  %v3352_v36 = vor.u32 %v4472_v26, %v3351_v25  ;;  %v4426_v12 = vld [vmem:[%s6983_s1 + $0x1cc] sm:$0xf]  ;;  %v3036_v26 = vor.u32 %v4390_v16, %v3033_v17 }
  0x7d   :  { %v2951_v30 = vld [vmem:[%s6983_s1 + $0x8] sm:$0xf]  ;;  %1459 = vmatpush.bf16.msrb.mxu0 %v3240_v18  ;;  %v4372_v33 = vld [vmem:[%s6983_s1 + $0x14] sm:$0xf0]  ;;  %v3096_v42 = vor.u32 %v4408_v29, %v3095_v28  ;;  %v3180_v19 = vor.u32 %v4426_v12, %v3177_v13  ;;  %v3161_v25 = vld [vmem:[%s6983_s1 + $0x1b8] sm:$0xf0] }
  0x7e   :  { %v3575_v34 = vld [vmem:[%s6983_s1 + $0x4e8] sm:$0xf]  ;;  %v4528_v35 = vld [vmem:[%s6983_s1 + $0x4f4] sm:$0xf0]  ;;  %v2952_v46 = vor.u32 %v4372_v33, %v2951_v30  ;;  %v4386_v28 = vld [vmem:[%s6983_s1 + $0x8c] sm:$0xf] }
  0x7f   :  { %1472 = vmatpush.bf16.msra.mxu2 %v3368_v21  ;;  %v3079_v38 = vld [vmem:[%s6983_s1 + $0x108] sm:$0xf]  ;;  %v4436_v40 = vld [vmem:[%s6983_s1 + $0x214] sm:$0xf0]  ;;  %v3576_v50 = vor.u32 %v4528_v35, %v3575_v34  ;;  %v3017_v29 = vld [vmem:[%s6983_s1 + $0x98] sm:$0xf0] }
  0x80   :  { %v3207_v39 = vld [vmem:[%s6983_s1 + $0x208] sm:$0xf]  ;;  %1446 = vmatpush.bf16.msra.mxu3 %v3112_v24  ;;  %v4468_v43 = vld [vmem:[%s6983_s1 + $0x314] sm:$0xf0]  ;;  %1434 = vmatpush.bf16.msrb.mxu1 %v2968_v27  ;;  %v4422_v24 = vld [vmem:[%s6983_s1 + $0x1ac] sm:$0xf] }
  0x81   :  { %v3335_v41 = vld [vmem:[%s6983_s1 + $0x308] sm:$0xf]  ;;  %v4564_v45 = vld [vmem:[%s6983_s1 + $0x614] sm:$0xf0]  ;;  %1460 = vmatpush.bf16.msrb.mxu0 %v3224_v31  ;;  %v3208_v51 = vor.u32 %v4436_v40, %v3207_v39  ;;  %v3164_v31 = vor.u32 %v4422_v24, %v3161_v25  ;;  %v3145_v39 = vld [vmem:[%s6983_s1 + $0x198] sm:$0xf0]  ;;  %v3020_v40 = vor.u32 %v4386_v28, %v3017_v29 }
  0x82   :  { %v3719_v44 = vld [vmem:[%s6983_s1 + $0x608] sm:$0xf]  ;;  %v4404_v47 = vld [vmem:[%s6983_s1 + $0x114] sm:$0xf0]  ;;  %v3336_v57 = vor.u32 %v4468_v43, %v3335_v41  ;;  %v3001_v43 = vld [vmem:[%s6983_s1 + $0x78] sm:$0xf0] }
  0x83   :  { %v3703_v52 = vld [vmem:[%s6983_s1 + $0x5e8] sm:$0xf]  ;;  %v4560_v53 = vld [vmem:[%s6983_s1 + $0x5f4] sm:$0xf0]  ;;  %1473 = vmatpush.bf16.msra.mxu2 %v3352_v36  ;;  %v3720_v59 = vor.u32 %v4564_v45, %v3719_v44  ;;  %v3080_v0 = vor.u32 %v4404_v47, %v3079_v38  ;;  %v4418_v38 = vld [vmem:[%s6983_s1 + $0x18c] sm:$0xf] }
  0x84   :  { %v3559_v55 = vld [vmem:[%s6983_s1 + $0x4c8] sm:$0xf]  ;;  %v4524_v58 = vld [vmem:[%s6983_s1 + $0x4d4] sm:$0xf0]  ;;  %1447 = vmatpush.bf16.msra.mxu3 %v3096_v42  ;;  %1435 = vmatpush.bf16.msrb.mxu1 %v2952_v46  ;;  %v3704_v2 = vor.u32 %v4560_v53, %v3703_v52  ;;  %v4382_v42 = vld [vmem:[%s6983_s1 + $0x6c] sm:$0xf]  ;;  %v3148_v45 = vor.u32 %v4418_v38, %v3145_v39 }
  0x85   :  { %1461 = vmatpush.bf16.msrb.mxu0 %v3208_v51  ;;  %v3560_v5 = vor.u32 %v4524_v58, %v3559_v55  ;;  %v3687_v7 = vld [vmem:[%s6983_s1 + $0x5c8] sm:$0xf]  ;;  %v4556_v9 = vld [vmem:[%s6983_s1 + $0x5d4] sm:$0xf0]  ;;  %v3129_v51 = vld [vmem:[%s6983_s1 + $0x178] sm:$0xf0]  ;;  %v3004_v52 = vor.u32 %v4382_v42, %v3001_v43 }
  0x86   :  { %v3543_v10 = vld [vmem:[%s6983_s1 + $0x4a8] sm:$0xf]  ;;  %v4520_v11 = vld [vmem:[%s6983_s1 + $0x4b4] sm:$0xf0]  ;;  %v3688_v15 = vor.u32 %v4556_v9, %v3687_v7  ;;  %v4378_v55 = vld [vmem:[%s6983_s1 + $0x4c] sm:$0xf] }
  0x87   :  { %1474 = vmatpush.bf16.msra.mxu2 %v3336_v57  ;;  %v3544_v18 = vor.u32 %v4520_v11, %v3543_v10  ;;  %v3671_v20 = vld [vmem:[%s6983_s1 + $0x5a8] sm:$0xf]  ;;  %v4552_v21 = vld [vmem:[%s6983_s1 + $0x5b4] sm:$0xf0]  ;;  %1436 = vmatmul.bf16.vlgmr.msrb.gmra.mxu1 %v5039_v56  ;;  %v2985_v57 = vld [vmem:[%s6983_s1 + $0x58] sm:$0xf0] }
  0x88   :  { %1480 = vmatpush.bf16.msra.mxu1 %v3576_v50  ;;  %1448 = vmatpush.bf16.msra.mxu3 %v3080_v0  ;;  %v3527_v22 = vld [vmem:[%s6983_s1 + $0x488] sm:$0xf]  ;;  %v4516_v23 = vld [vmem:[%s6983_s1 + $0x494] sm:$0xf0]  ;;  %v3672_v27 = vor.u32 %v4552_v21, %v3671_v20  ;;  %v4414_v50 = vld [vmem:[%s6983_s1 + $0x16c] sm:$0xf]  ;;  %v2988_v4 = vor.u32 %v4378_v55, %v2985_v57 }
  0x89   :  { %1513 = vmatpush.bf16.msra.mxu0 %v3720_v59  ;;  %v3528_v30 = vor.u32 %v4516_v23, %v3527_v22  ;;  %v3655_v33 = vld [vmem:[%s6983_s1 + $0x588] sm:$0xf]  ;;  %v4548_v34 = vld [vmem:[%s6983_s1 + $0x594] sm:$0xf0]  ;;  %v3132_v59 = vor.u32 %v4414_v50, %v3129_v51  ;;  %v3113_v3 = vld [vmem:[%s6983_s1 + $0x158] sm:$0xf0] }
  0x8a   :  { %1462 = vmatmul.bf16.vlgmr.msrb.gmra.mxu0 %v5037_v54  ;;  %1475 = vmatmul.bf16.vlgmr.msra.gmra.mxu2 %v5047_v63  ;;  %v3511_v35 = vld [vmem:[%s6983_s1 + $0x468] sm:$0xf]  ;;  %v4512_v36 = vld [vmem:[%s6983_s1 + $0x474] sm:$0xf0]  ;;  %v3656_v41 = vor.u32 %v4548_v34, %v3655_v33  ;;  %v2969_v7 = vld [vmem:[%s6983_s1 + $0x38] sm:$0xf0] }
  0x8b   :  { %1519 = vmatpush.bf16.msrb.mxu2 %v3068_v1  ;;  %1449 = vmatmul.bf16.vlgmr.msra.gmra.mxu3 %v5069_v8  ;;  %v3512_v44 = vor.u32 %v4512_v36, %v3511_v35  ;;  %v3639_v46 = vld [vmem:[%s6983_s1 + $0x568] sm:$0xf]  ;;  %v4544_v47 = vld [vmem:[%s6983_s1 + $0x574] sm:$0xf0]  ;;  %v3097_v16 = vld [vmem:[%s6983_s1 + $0x138] sm:$0xf0] }
  0x8c   :  { %1493 = vmatpush.bf16.msrb.mxu3 %v3704_v2  ;;  %1481 = vmatpush.bf16.msra.mxu1 %v3560_v5  ;;  %v3495_v48 = vld [vmem:[%s6983_s1 + $0x448] sm:$0xf]  ;;  %v4508_v49 = vld [vmem:[%s6983_s1 + $0x454] sm:$0xf0]  ;;  %v3640_v53 = vor.u32 %v4544_v47, %v3639_v46  ;;  %v4410_v2 = vld [vmem:[%s6983_s1 + $0x14c] sm:$0xf] }
  0x8d   :  { %1532 = vmatpush.bf16.msrb.mxu0 %v3196_v6  ;;  %v3496_v58 = vor.u32 %v4508_v49, %v3495_v48  ;;  %v3623_v60 = vld [vmem:[%s6983_s1 + $0x548] sm:$0xf]  ;;  %v4540_v62 = vld [vmem:[%s6983_s1 + $0x554] sm:$0xf0]  ;;  %v4374_v6 = vld [vmem:[%s6983_s1 + $0x2c] sm:$0xf]  ;;  %v3116_v10 = vor.u32 %v4410_v2, %v3113_v3 }
  0x8e   :  { %v3479_v0 = vld [vmem:[%s6983_s1 + $0x428] sm:$0xf]  ;;  %v4504_v1 = vld [vmem:[%s6983_s1 + $0x434] sm:$0xf0]  ;;  %v3624_v5 = vor.u32 %v4540_v62, %v3623_v60  ;;  %v2972_v17 = vor.u32 %v4374_v6, %v2969_v7  ;;  %v4370_v22 = vld [vmem:[%s6983_s1 + $0xc] sm:$0xf] }
  0x8f   :  { %1520 = vmatpush.bf16.msrb.mxu2 %v3052_v14  ;;  %v3480_v9 = vor.u32 %v4504_v1, %v3479_v0  ;;  %v3607_v11 = vld [vmem:[%s6983_s1 + $0x528] sm:$0xf]  ;;  %v4536_v12 = vld [vmem:[%s6983_s1 + $0x534] sm:$0xf0]  ;;  %v2953_v23 = vld [vmem:[%s6983_s1 + $0x18] sm:$0xf0] }
  0x90   :  { %1494 = vmatpush.bf16.msrb.mxu3 %v3688_v15  ;;  %1482 = vmatpush.bf16.msra.mxu1 %v3544_v18  ;;  %v3463_v13 = vld [vmem:[%s6983_s1 + $0x408] sm:$0xf]  ;;  %v4500_v14 = vld [vmem:[%s6983_s1 + $0x414] sm:$0xf0]  ;;  %v4406_v15 = vld [vmem:[%s6983_s1 + $0x12c] sm:$0xf]  ;;  %v3608_v20 = vor.u32 %v4536_v12, %v3607_v11  ;;  %v2956_v34 = vor.u32 %v4370_v22, %v2953_v23 }
  0x91   :  { %1533 = vmatpush.bf16.msrb.mxu0 %v3180_v19  ;;  %v4462_v18 = vld [vmem:[%s6983_s1 + $0x2ec] sm:$0xf]  ;;  %v3321_v19 = vld [vmem:[%s6983_s1 + $0x2f8] sm:$0xf0]  ;;  %v3591_v21 = vld [vmem:[%s6983_s1 + $0x508] sm:$0xf]  ;;  %v3464_v24 = vor.u32 %v4500_v14, %v3463_v13  ;;  %v3100_v25 = vor.u32 %v4406_v15, %v3097_v16 }
  0x92   :  { %v3449_v28 = vld [vmem:[%s6983_s1 + $0x3f8] sm:$0xf0]  ;;  %v3324_v29 = vor.u32 %v4462_v18, %v3321_v19  ;;  %v4458_v33 = vld [vmem:[%s6983_s1 + $0x2cc] sm:$0xf]  ;;  %s2930_s9 = sshll.u32 %s4753_s8, 4  ;;  %s2931_s9 = int_to_ptr.vmem [resolvable:$true] %s2930_s9 }
  0x93   :  { %1521 = vmatpush.bf16.msrb.mxu2 %v3036_v26  ;;  %v4532_v26 = vld [vmem:[%s6983_s1 + $0x514] sm:$0xf0]  ;;  %v3305_v35 = vld [vmem:[%s6983_s1 + $0x2d8] sm:$0xf0]  ;;  %v4402_v36 = vld [vmem:[%s6983_s1 + $0x10c] sm:$0xf] }
  0x94   :  { %1495 = vmatpush.bf16.msrb.mxu3 %v3672_v27  ;;  %1483 = vmatpush.bf16.msra.mxu1 %v3528_v30  ;;  %v4494_v27 = vld [vmem:[%s6983_s1 + $0x3ec] sm:$0xf]  ;;  %v3081_v38 = vld [vmem:[%s6983_s1 + $0x118] sm:$0xf0]  ;;  %v3592_v39 = vor.u32 %v4532_v26, %v3591_v21 }
  0x95   :  { %1534 = vmatpush.bf16.msrb.mxu0 %v3164_v31  ;;  %v4526_v30 = vld [vmem:[%s6983_s1 + $0x4ec] sm:$0xf]  ;;  %v3577_v31 = vld [vmem:[%s6983_s1 + $0x4f8] sm:$0xf0]  ;;  %v3452_v42 = vor.u32 %v4494_v27, %v3449_v28  ;;  %v3084_v46 = vor.u32 %v4402_v36, %v3081_v38 }
  0x96   :  { %v3580_v43 = vor.u32 %v4526_v30, %v3577_v31  ;;  %v3433_v47 = vld [vmem:[%s6983_s1 + $0x3d8] sm:$0xf0]  ;;  %v4522_v48 = vld [vmem:[%s6983_s1 + $0x4cc] sm:$0xf] }
  0x97   :  { %1522 = vmatpush.bf16.msrb.mxu2 %v3020_v40  ;;  %v4558_v40 = vld [vmem:[%s6983_s1 + $0x5ec] sm:$0xf]  ;;  %v3561_v49 = vld [vmem:[%s6983_s1 + $0x4d8] sm:$0xf0] }
  0x98   :  { %1496 = vmatpush.bf16.msrb.mxu3 %v3656_v41  ;;  %1484 = vmatpush.bf16.msra.mxu1 %v3512_v44  ;;  %v3705_v41 = vld [vmem:[%s6983_s1 + $0x5f8] sm:$0xf0]  ;;  %v4490_v44 = vld [vmem:[%s6983_s1 + $0x3cc] sm:$0xf] }
  0x99   :  { %1535 = vmatpush.bf16.msrb.mxu0 %v3148_v45  ;;  %v3308_v45 = vor.u32 %v4458_v33, %v3305_v35  ;;  %v3708_v50 = vor.u32 %v4558_v40, %v3705_v41  ;;  %v4454_v51 = vld [vmem:[%s6983_s1 + $0x2ac] sm:$0xf]  ;;  %v3689_v55 = vld [vmem:[%s6983_s1 + $0x5d8] sm:$0xf0]  ;;  %v3436_v57 = vor.u32 %v4490_v44, %v3433_v47 }
  0x9a   :  { %3727 = vmatmul.msk.bf16.vlgmr.msra.gmra.mxu0 %vm1242_vm0, %v5172_v61  ;;  %v3417_v62 = vld [vmem:[%s6983_s1 + $0x3b8] sm:$0xf0]  ;;  %v4518_v0 = vld [vmem:[%s6983_s1 + $0x4ac] sm:$0xf] }
  0x9b   :  { %1523 = vmatpush.bf16.msrb.mxu2 %v3004_v52  ;;  %v3289_v52 = vld [vmem:[%s6983_s1 + $0x2b8] sm:$0xf0]  ;;  %v4450_v3 = vld [vmem:[%s6983_s1 + $0x28c] sm:$0xf] }
  0x9c   :  { %1497 = vmatpush.bf16.msrb.mxu3 %v3640_v53  ;;  %1485 = vmatpush.bf16.msra.mxu1 %v3496_v58  ;;  %v4554_v53 = vld [vmem:[%s6983_s1 + $0x5cc] sm:$0xf]  ;;  %v3564_v58 = vor.u32 %v4522_v48, %v3561_v49  ;;  %v3292_v60 = vor.u32 %v4454_v51, %v3289_v52  ;;  %v3545_v1 = vld [vmem:[%s6983_s1 + $0x4b8] sm:$0xf0] }
  0x9d   :  { %1536 = vmatpush.bf16.msrb.mxu0 %v3132_v59  ;;  %v4486_v59 = vld [vmem:[%s6983_s1 + $0x3ac] sm:$0xf]  ;;  %v3692_v2 = vor.u32 %v4554_v53, %v3689_v55  ;;  %v3673_v6 = vld [vmem:[%s6983_s1 + $0x5b8] sm:$0xf0] }
  0x9e   :  { %v3420_v7 = vor.u32 %v4486_v59, %v3417_v62  ;;  %v4514_v12 = vld [vmem:[%s6983_s1 + $0x48c] sm:$0xf]  ;;  %v3529_v13 = vld [vmem:[%s6983_s1 + $0x498] sm:$0xf0] }
  0x9f   :  { %1524 = vmatpush.bf16.msrb.mxu2 %v2988_v4  ;;  %v3273_v4 = vld [vmem:[%s6983_s1 + $0x298] sm:$0xf0]  ;;  %v4446_v15 = vld [vmem:[%s6983_s1 + $0x26c] sm:$0xf] }
  0xa0   :  { %1498 = vmatpush.bf16.msrb.mxu3 %v3624_v5  ;;  %1486 = vmatpush.bf16.msra.mxu1 %v3480_v9  ;;  %v4550_v5 = vld [vmem:[%s6983_s1 + $0x5ac] sm:$0xf]  ;;  %v3548_v9 = vor.u32 %v4518_v0, %v3545_v1  ;;  %v3276_v11 = vor.u32 %v4450_v3, %v3273_v4  ;;  %v3257_v16 = vld [vmem:[%s6983_s1 + $0x278] sm:$0xf0]  ;;  %v6009_v4 = vld [vmem:[%s6984_s2] sm:$0xf] }
  0xa1   :  { %1537 = vmatpush.bf16.msrb.mxu0 %v3116_v10  ;;  %v4482_v10 = vld [vmem:[%s6983_s1 + $0x38c] sm:$0xf]  ;;  %v3676_v14 = vor.u32 %v4550_v5, %v3673_v6  ;;  %v3260_v22 = vor.u32 %v4446_v15, %v3257_v16  ;;  %v3385_v23 = vld [vmem:[%s6983_s1 + $0x378] sm:$0xf0]  ;;  %v3843_v15 = vld [vmem:[%s6985_s3 + $0xe0] sm:$0xf] }
  0xa2   :  { %v4546_v18 = vld [vmem:[%s6983_s1 + $0x58c] sm:$0xf]  ;;  %v3641_v31 = vld [vmem:[%s6983_s1 + $0x578] sm:$0xf0]  ;;  %v4595_v16 = vld [vmem:[%s6985_s3 + $0xec] sm:$0xf0] }
  0xa3   :  { %1525 = vmatpush.bf16.msrb.mxu2 %v2972_v17  ;;  %v4478_v21 = vld [vmem:[%s6983_s1 + $0x36c] sm:$0xf]  ;;  %v3369_v40 = vld [vmem:[%s6983_s1 + $0x358] sm:$0xf0] }
  0xa4   :  { %1499 = vmatpush.bf16.msrb.mxu3 %v3608_v20  ;;  %1487 = vmatpush.bf16.msra.mxu1 %v3464_v24  ;;  %v3532_v20 = vor.u32 %v4514_v12, %v3529_v13  ;;  %v4510_v24 = vld [vmem:[%s6983_s1 + $0x46c] sm:$0xf]  ;;  %v3625_v48 = vld [vmem:[%s6983_s1 + $0x558] sm:$0xf0] }
  0xa5   :  { %1538 = vmatpush.bf16.msrb.mxu0 %v3100_v25  ;;  %v3513_v25 = vld [vmem:[%s6983_s1 + $0x478] sm:$0xf0]  ;;  %v4442_v28 = vld [vmem:[%s6983_s1 + $0x24c] sm:$0xf] }
  0xa6   :  { %v4542_v30 = vld [vmem:[%s6983_s1 + $0x56c] sm:$0xf]  ;;  %v3516_v35 = vor.u32 %v4510_v24, %v3513_v25  ;;  %v3353_v53 = vld [vmem:[%s6983_s1 + $0x338] sm:$0xf0]  ;;  %v3844_v25 = vor.u32 %v4595_v16, %v3843_v15 }
  0xa7   :  { %1526 = vmatpush.bf16.msrb.mxu2 %v2956_v34  ;;  %1488 = vmatmul.bf16.vlgmr.msra.gmra.mxu1 %v5233_v32  ;;  %v5914_v17 = vpop.f32.mrf.mxu0  ;;  %v3388_v34 = vor.u32 %v4478_v21, %v3385_v23  ;;  %v4474_v36 = vld [vmem:[%s6983_s1 + $0x34c] sm:$0xf]  ;;  %v3609_v1 = vld [vmem:[%s6983_s1 + $0x538] sm:$0xf0]  ;;  %v4627_v21 = vld [vmem:[%s6985_s3 + $0x1ec] sm:$0xf0] }
  0xa8   :  { %1545 = vmatpush.bf16.msrb.mxu1 %v3324_v29  ;;  %1500 = vmatpush.bf16.msrb.mxu3 %v3592_v39  ;;  %v3241_v29 = vld [vmem:[%s6983_s1 + $0x258] sm:$0xf0]  ;;  %v4506_v41 = vld [vmem:[%s6983_s1 + $0x44c] sm:$0xf]  ;;  %v3372_v49 = vor.u32 %v4474_v36, %v3369_v40  ;;  %v4587_v40 = vld [vmem:[%s6985_s3 + $0xac] sm:$0xf0] }
  0xa9   :  { %1539 = vmatpush.bf16.msrb.mxu0 %v3084_v46  ;;  %v3244_v38 = vor.u32 %v4442_v28, %v3241_v29  ;;  %v4438_v44 = vld [vmem:[%s6983_s1 + $0x22c] sm:$0xf]  ;;  %v3721_v3 = vld [vmem:[%s6983_s1 + $0x618] sm:$0xf0]  ;;  %v3827_v28 = vld [vmem:[%s6985_s3 + $0xc0] sm:$0xf] }
  0xaa   :  { %1527 = vmatmul.bf16.vlgmr.msrb.gmra.mxu2 %v5039_v56  ;;  %v3401_v56 = vld [vmem:[%s6983_s1 + $0x398] sm:$0xf0]  ;;  %v5934_v27 = vpop.f32.mrf.mxu1  ;;  %v4538_v47 = vld [vmem:[%s6983_s1 + $0x54c] sm:$0xf]  ;;  %v4591_v29 = vld [vmem:[%s6985_s3 + $0xcc] sm:$0xf0] }
  0xab   :  { %1571 = vmatpush.bf16.msra.mxu2 %v3580_v43  ;;  %1501 = vmatmul.bf16.vlgmr.msrb.gmra.mxu3 %v5244_v37  ;;  %v3404_v19 = vor.u32 %v4482_v10, %v3401_v56  ;;  %v3644_v43 = vor.u32 %v4542_v30, %v3641_v31  ;;  %v4470_v51 = vld [vmem:[%s6983_s1 + $0x32c] sm:$0xf]  ;;  %v3465_v12 = vld [vmem:[%s6983_s1 + $0x418] sm:$0xf0]  ;;  %v3955_v31 = vld [vmem:[%s6985_s3 + $0x1c0] sm:$0xf]  ;;  %v3828_v36 = vor.u32 %v4591_v29, %v3827_v28 }
  0xac   :  { %1558 = vmatpush.bf16.msra.mxu3 %v3452_v42  ;;  %1546 = vmatpush.bf16.msrb.mxu1 %v3308_v45  ;;  %v3497_v42 = vld [vmem:[%s6983_s1 + $0x458] sm:$0xf0]  ;;  %v4502_v55 = vld [vmem:[%s6983_s1 + $0x42c] sm:$0xf]  ;;  %v3356_v6 = vor.u32 %v4470_v51, %v3353_v53  ;;  %v4579_v51 = vld [vmem:[%s6985_s3 + $0x6c] sm:$0xf0] }
  0xad   :  { %1584 = vmatpush.bf16.msra.mxu0 %v3708_v50  ;;  %v5948_v33 = vpop.f32.mrf.mxu2  ;;  %v3225_v45 = vld [vmem:[%s6983_s1 + $0x238] sm:$0xf0]  ;;  %v3500_v50 = vor.u32 %v4506_v41, %v3497_v42  ;;  %v4434_v59 = vld [vmem:[%s6983_s1 + $0x20c] sm:$0xf]  ;;  %v3907_v53 = vld [vmem:[%s6985_s3 + $0x160] sm:$0xf] }
  0xae   :  { %1540 = vmatmul.bf16.vlgmr.msrb.gmra.mxu0 %v5069_v8  ;;  %v3657_v8 = vld [vmem:[%s6983_s1 + $0x598] sm:$0xf0]  ;;  %v5953_v39 = vpop.f32.mrf.mxu3  ;;  %v3228_v52 = vor.u32 %v4438_v44, %v3225_v45  ;;  %v4534_v62 = vld [vmem:[%s6983_s1 + $0x52c] sm:$0xf]  ;;  %v4583_v45 = vld [vmem:[%s6985_s3 + $0x8c] sm:$0xf0] }
  0xaf   :  { %1572 = vmatpush.bf16.msra.mxu2 %v3564_v58  ;;  %v3660_v26 = vor.u32 %v4546_v18, %v3657_v8  ;;  %v1257_v46 = vpop.f32.mrf.mxu0  ;;  %v3628_v58 = vor.u32 %v4538_v47, %v3625_v48  ;;  %v4498_v56 = vld [vmem:[%s6983_s1 + $0x40c] sm:$0xf]  ;;  %v3973_v28 = vld [vmem:[%s6985_s3 + $0x1f0] sm:$0xf0] }
  0xb0   :  { %1559 = vmatpush.bf16.msra.mxu3 %v3436_v57  ;;  %1547 = vmatpush.bf16.msrb.mxu1 %v3292_v60  ;;  %v3481_v57 = vld [vmem:[%s6983_s1 + $0x438] sm:$0xf0]  ;;  %v4530_v18 = vld [vmem:[%s6983_s1 + $0x50c] sm:$0xf]  ;;  %v3468_v24 = vor.u32 %v4498_v56, %v3465_v12  ;;  %v3875_v56 = vld [vmem:[%s6985_s3 + $0x120] sm:$0xf] }
  0xb1   :  { %1585 = vmatpush.bf16.msra.mxu0 %v3692_v2  ;;  %v3209_v60 = vld [vmem:[%s6983_s1 + $0x218] sm:$0xf0]  ;;  %v4562_v2 = vld [vmem:[%s6983_s1 + $0x60c] sm:$0xf] }
  0xb2   :  { %v1270_v0 = vpop.f32.mrf.mxu1  ;;  %v3212_v10 = vor.u32 %v4434_v59, %v3209_v60  ;;  %v3724_v8 = vor.u32 %v4562_v2, %v3721_v3  ;;  %v3763_v60 = vld [vmem:[%s6985_s3 + $0x40] sm:$0xf]  ;;  %v4607_v2 = vld [vmem:[%s6985_s3 + $0x14c] sm:$0xf0] }
  0xb3   :  { %1573 = vmatpush.bf16.msra.mxu2 %v3548_v9  ;;  %v4466_v9 = vld [vmem:[%s6983_s1 + $0x30c] sm:$0xf] }
  0xb4   :  { %1560 = vmatpush.bf16.msra.mxu3 %v3420_v7  ;;  %1548 = vmatpush.bf16.msrb.mxu1 %v3276_v11  ;;  %v3484_v7 = vor.u32 %v4502_v55, %v3481_v57  ;;  %v3337_v11 = vld [vmem:[%s6983_s1 + $0x318] sm:$0xf0] }
  0xb5   :  { %1586 = vmatpush.bf16.msra.mxu0 %v3676_v14  ;;  %v1283_v5 = vpop.f32.mrf.mxu2  ;;  %v3612_v14 = vor.u32 %v4534_v62, %v3609_v1  ;;  %v3340_v23 = vor.u32 %v4466_v9, %v3337_v11  ;;  %v4575_v62 = vld [vmem:[%s6985_s3 + $0x4c] sm:$0xf0]  ;;  %v3747_v9 = vld [vmem:[%s6985_s3 + $0x20] sm:$0xf] }
  0xb6   :  { %v1296_v13 = vpop.f32.mrf.mxu3 }
  0xb7   :  { %1574 = vmatpush.bf16.msra.mxu2 %v3532_v20  ;;  %v3971_v20 = vld [vmem:[%s6985_s3 + $0x1e0] sm:$0xf] }
  0xb8   :  { %1561 = vmatpush.bf16.msra.mxu3 %v3404_v19  ;;  %1549 = vmatpush.bf16.msrb.mxu1 %v3260_v22  ;;  %v3593_v19 = vld [vmem:[%s6983_s1 + $0x518] sm:$0xf0]  ;;  %v254_v22 = vperm.slane %v6009_v4, 0  ;;  %v3972_v30 = vor.u32 %v4627_v21, %v3971_v20  ;;  %v3731_v13 = vld [vmem:[%s6985_s3] sm:$0xf] }
  0xb9   :  { %1587 = vmatpush.bf16.msra.mxu0 %v3660_v26  ;;  %v3596_v26 = vor.u32 %v4530_v18, %v3593_v19  ;;  %v4593_v18 = vld [vmem:[%s6985_s3 + $0xe4] sm:$0xf]  ;;  %v4099_v19 = vld [vmem:[%s6985_s3 + $0x2e0] sm:$0xf]  ;;  %v4659_v20 = vld [vmem:[%s6985_s3 + $0x2ec] sm:$0xf0] }
  0xbb   :  { %1575 = vmatpush.bf16.msra.mxu2 %v3516_v35  ;;  %v1256_v35 = vadd.f32 %v5914_v17, %v254_v22  ;;  %v4619_v17 = vld [vmem:[%s6985_s3 + $0x1ac] sm:$0xf0]  ;;  %v3845_v22 = vld [vmem:[%s6985_s3 + $0xf0] sm:$0xf0] }
  0xbc   :  { %1562 = vmatpush.bf16.msra.mxu3 %v3388_v34  ;;  %1550 = vmatpush.bf16.msrb.mxu1 %v3244_v38  ;;  %v4623_v34 = vld [vmem:[%s6985_s3 + $0x1cc] sm:$0xf0]  ;;  %v3811_v38 = vld [vmem:[%s6985_s3 + $0xa0] sm:$0xf] }
  0xbd   :  { %1588 = vmatpush.bf16.msra.mxu0 %v3644_v43  ;;  %v3956_v41 = vor.u32 %v4623_v34, %v3955_v31  ;;  %v1269_v42 = vadd.f32 %v5934_v27, %v1256_v35  ;;  %v1333_v43 = vpop.f32.mrf.mxu2  ;;  %v3812_v44 = vor.u32 %v4587_v40, %v3811_v38  ;;  %v3848_v31 = vor.u32 %v4593_v18, %v3845_v22  ;;  %v4083_v35 = vld [vmem:[%s6985_s3 + $0x2c0] sm:$0xf]  ;;  %v4589_v38 = vld [vmem:[%s6985_s3 + $0xc4] sm:$0xf]  ;;  %v3829_v40 = vld [vmem:[%s6985_s3 + $0xd0] sm:$0xf0] }
  0xbf   :  { %1576 = vmatpush.bf16.msra.mxu2 %v3500_v50  ;;  %v1282_v27 = vadd.f32 %v5948_v33, %v1269_v42  ;;  %v3779_v50 = vld [vmem:[%s6985_s3 + $0x60] sm:$0xf]  ;;  %v4611_v33 = vld [vmem:[%s6985_s3 + $0x16c] sm:$0xf0]  ;;  %v3957_v42 = vld [vmem:[%s6985_s3 + $0x1d0] sm:$0xf0] }
  0xc0   :  { %1563 = vmatpush.bf16.msra.mxu3 %v3372_v49  ;;  %1551 = vmatpush.bf16.msrb.mxu1 %v3228_v52  ;;  %v3908_v0 = vor.u32 %v4611_v33, %v3907_v53  ;;  %v4581_v53 = vld [vmem:[%s6985_s3 + $0x84] sm:$0xf]  ;;  %v3797_v33 = vld [vmem:[%s6985_s3 + $0x90] sm:$0xf0] }
  0xc1   :  { %1589 = vmatpush.bf16.msra.mxu0 %v3628_v58  ;;  %v1295_v55 = vadd.f32 %v5953_v39, %v1282_v27  ;;  %v3780_v58 = vor.u32 %v4579_v51, %v3779_v50  ;;  %v3891_v39 = vld [vmem:[%s6985_s3 + $0x140] sm:$0xf] }
  0xc2   :  { %v3892_v11 = vor.u32 %v4607_v2, %v3891_v39  ;;  %v4051_v51 = vld [vmem:[%s6985_s3 + $0x280] sm:$0xf]  ;;  %v4643_v39 = vld [vmem:[%s6985_s3 + $0x26c] sm:$0xf0]  ;;  %v255_v2 = vperm.slane %v6009_v4, 1 }
  0xc3   :  { %1577 = vmatpush.bf16.msra.mxu2 %v3484_v7  ;;  %v1307_v47 = vpop.f32.mrf.mxu0 }
  0xc4   :  { %1564 = vmatpush.bf16.msra.mxu3 %v3356_v6  ;;  %1552 = vmatpush.bf16.msrb.mxu1 %v3212_v10  ;;  %v1320_v48 = vpop.f32.mrf.mxu1  ;;  %v1308_v59 = vadd.f32 %v1307_v47, %v1295_v55  ;;  %v3764_v6 = vor.u32 %v4575_v62, %v3763_v60  ;;  %v4571_v10 = vld [vmem:[%s6985_s3 + $0x2c] sm:$0xf0]  ;;  %v4585_v47 = vld [vmem:[%s6985_s3 + $0xa4] sm:$0xf]  ;;  %v3800_v62 = vor.u32 %v4581_v53, %v3797_v33  ;;  %v3835_v33 = vld [vmem:[%s6985_s3 + $0xc8] sm:$0xf] }
  0xc5   :  { %1590 = vmatpush.bf16.msra.mxu0 %v3612_v14  ;;  %v1335_v57 = vpop.f32.mrf.mxu2  ;;  %v3748_v12 = vor.u32 %v4571_v10, %v3747_v9  ;;  %v4567_v14 = vld [vmem:[%s6985_s3 + $0xc] sm:$0xf0]  ;;  %v4609_v10 = vld [vmem:[%s6985_s3 + $0x164] sm:$0xf] }
  0xc6   :  { %v1321_v7 = vadd.f32 %v1320_v48, %v1308_v59  ;;  %v3732_v29 = vor.u32 %v4567_v14, %v3731_v13  ;;  %v4617_v48 = vld [vmem:[%s6985_s3 + $0x1a4] sm:$0xf]  ;;  %v3925_v59 = vld [vmem:[%s6985_s3 + $0x190] sm:$0xf0] }
  0xc7   :  { %1553 = vmatmul.bf16.vlgmr.msrb.gmra.mxu1 %v5037_v54  ;;  %1578 = vmatpush.bf16.msra.mxu2 %v3468_v24  ;;  %v3939_v54 = vld [vmem:[%s6985_s3 + $0x1a0] sm:$0xf]  ;;  %v4599_v24 = vld [vmem:[%s6985_s3 + $0x10c] sm:$0xf0]  ;;  %v4573_v14 = vld [vmem:[%s6985_s3 + $0x44] sm:$0xf] }
  0xc8   :  { %1604 = vmatpush.bf16.msra.mxu1 %v3724_v8  ;;  %1565 = vmatpush.bf16.msra.mxu3 %v3340_v23  ;;  %v3940_v46 = vor.u32 %v4619_v17, %v3939_v54  ;;  %v1334_v16 = vadd.f32 %v1333_v43, %v1321_v7  ;;  %v3859_v23 = vld [vmem:[%s6985_s3 + $0x100] sm:$0xf]  ;;  %v4621_v17 = vld [vmem:[%s6985_s3 + $0x1c4] sm:$0xf] }
  0xc9   :  { %1591 = vmatpush.bf16.msra.mxu0 %v3596_v26  ;;  %v4625_v26 = vld [vmem:[%s6985_s3 + $0x1e4] sm:$0xf]  ;;  %v3860_v34 = vor.u32 %v4599_v24, %v3859_v23  ;;  %v4003_v24 = vld [vmem:[%s6985_s3 + $0x220] sm:$0xf] }
  0xca   :  { %1579 = vmatmul.bf16.vlgmr.msra.gmra.mxu2 %v5233_v32  ;;  %v3923_v32 = vld [vmem:[%s6985_s3 + $0x180] sm:$0xf] }
  0xcb   :  { %1566 = vmatmul.bf16.vlgmr.msra.gmra.mxu3 %v5047_v63  ;;  %v3795_v63 = vld [vmem:[%s6985_s3 + $0x80] sm:$0xf]  ;;  %v1309_v3 = vpop.f32.mrf.mxu0 }
  0xcc   :  { %2396 = vmatpush.bf16.msrb.mxu3 %v3844_v25  ;;  %2409 = vmatpush.bf16.msrb.mxu1 %v3972_v30  ;;  %v3796_v49 = vor.u32 %v4583_v45, %v3795_v63  ;;  %v6104_v1 = vpop.f32.mrf.mxu3  ;;  %v1322_v5 = vpop.f32.mrf.mxu1  ;;  %v4100_v25 = vor.u32 %v4659_v20, %v4099_v19  ;;  %v1610_v30 = vmax.f32 %v1334_v16, 0.0  ;;  %v3832_v63 = vor.u32 %v4589_v38, %v3829_v40  ;;  %v4067_v45 = vld [vmem:[%s6985_s3 + $0x2a0] sm:$0xf]  ;;  %v3765_v16 = vld [vmem:[%s6985_s3 + $0x50] sm:$0xf0] }
  0xcd   :  { %1592 = vmatmul.bf16.vlgmr.msra.gmra.mxu0 %v5244_v37  ;;  %v4615_v37 = vld [vmem:[%s6985_s3 + $0x18c] sm:$0xf0]  ;;  %v6132_v15 = vpop.f32.mrf.mxu2  ;;  %v4577_v5 = vld [vmem:[%s6985_s3 + $0x64] sm:$0xf]  ;;  %v1347_v13 = vadd.f32 %v6104_v1, %v255_v2  ;;  %v3893_v1 = vld [vmem:[%s6985_s3 + $0x150] sm:$0xf0]  ;;  %v3768_v23 = vor.u32 %v4573_v14, %v3765_v16 }
  0xce   :  { %v3924_v52 = vor.u32 %v4615_v37, %v3923_v32  ;;  %2422 = vmatpush.bf16.msrb.mxu2 %v4100_v25  ;;  %v3813_v32 = vld [vmem:[%s6985_s3 + $0xb0] sm:$0xf0]  ;;  %v3960_v37 = vor.u32 %v4621_v17, %v3957_v42  ;;  %v4605_v20 = vld [vmem:[%s6985_s3 + $0x144] sm:$0xf]  ;;  %v4635_v25 = vld [vmem:[%s6985_s3 + $0x22c] sm:$0xf0] }
  0xcf   :  { %v3816_v50 = vor.u32 %v4585_v47, %v3813_v32  ;;  %v4565_v38 = vld [vmem:[%s6985_s3 + $0x4] sm:$0xf]  ;;  %v4631_v17 = vld [vmem:[%s6985_s3 + $0x20c] sm:$0xf0]  ;;  %v3851_v42 = vld [vmem:[%s6985_s3 + $0xe8] sm:$0xf] }
  0xd0   :  { %2397 = vmatpush.bf16.msrb.mxu3 %v3828_v36  ;;  %2410 = vmatpush.bf16.msrb.mxu1 %v3956_v41  ;;  %v4655_v36 = vld [vmem:[%s6985_s3 + $0x2cc] sm:$0xf0]  ;;  %v3976_v41 = vor.u32 %v4625_v26, %v3973_v28  ;;  %v1360_v26 = vadd.f32 %v6132_v15, %v1347_v13  ;;  %v4569_v28 = vld [vmem:[%s6985_s3 + $0x24] sm:$0xf]  ;;  %v3877_v15 = vld [vmem:[%s6985_s3 + $0x130] sm:$0xf0] }
  0xd1   :  { %v4084_v54 = vor.u32 %v4655_v36, %v4083_v35  ;;  %v4601_v35 = vld [vmem:[%s6985_s3 + $0x124] sm:$0xf]  ;;  %v4596_v32 = vld [vmem:[%s6985_s3 + $0xf4] sm:$0xf0]  ;;  %v3979_v13 = vld [vmem:[%s6985_s3 + $0x1e8] sm:$0xf] }
  0xd2   :  { %v3852_v53 = vor.u32 %v4596_v32, %v3851_v42  ;;  %v4628_v14 = vld [vmem:[%s6985_s3 + $0x1f4] sm:$0xf0]  ;;  %v4679_v42 = vld [vmem:[%s6985_s3 + $0x38c] sm:$0xf0]  ;;  %v3771_v32 = vld [vmem:[%s6985_s3 + $0x48] sm:$0xf] }
  0xd3   :  { %2423 = vmatpush.bf16.msrb.mxu2 %v4084_v54  ;;  %v3987_v54 = vld [vmem:[%s6985_s3 + $0x200] sm:$0xf] }
  0xd4   :  { %2398 = vmatpush.bf16.msrb.mxu3 %v3812_v44  ;;  %2411 = vmatpush.bf16.msrb.mxu1 %v3940_v46  ;;  %v1348_v21 = vpop.f32.mrf.mxu3  ;;  %v6176_v44 = vpack.c.bf16 %v1610_v30, %v1610_v30  ;;  %v4651_v46 = vld [vmem:[%s6985_s3 + $0x2ac] sm:$0xf0]  ;;  %v3896_v30 = vor.u32 %v4605_v20, %v3893_v1  ;;  %v4584_v20 = vld [vmem:[%s6985_s3 + $0x94] sm:$0xf0]  ;;  %v4645_v1 = vld [vmem:[%s6985_s3 + $0x284] sm:$0xf] }
  0xd5   :  { %v1361_v43 = vpop.f32.mrf.mxu2  ;;  %v4068_v27 = vor.u32 %v4651_v46, %v4067_v45  ;;  %v4657_v45 = vld [vmem:[%s6985_s3 + $0x2e4] sm:$0xf]  ;;  %v4101_v46 = vld [vmem:[%s6985_s3 + $0x2f0] sm:$0xf0] }
  0xd6   :  { %v3880_v43 = vor.u32 %v4601_v35, %v3877_v15  ;;  %v4641_v35 = vld [vmem:[%s6985_s3 + $0x264] sm:$0xf]  ;;  %v4037_v15 = vld [vmem:[%s6985_s3 + $0x270] sm:$0xf0] }
  0xd7   :  { %3728 = vmatmul.msk.bf16.vlgmr.msra.gmra.mxu1 %vm1242_vm0, %v5172_v61  ;;  %v4603_v61 = vld [vmem:[%s6985_s3 + $0x12c] sm:$0xf0]  ;;  %2424 = vmatpush.bf16.msrb.mxu2 %v4068_v27  ;;  %v3861_v27 = vld [vmem:[%s6985_s3 + $0x110] sm:$0xf0] }
  0xd8   :  { %2399 = vmatpush.bf16.msrb.mxu3 %v3796_v49  ;;  %2412 = vmatpush.bf16.msrb.mxu1 %v3924_v52  ;;  %v3876_v8 = vor.u32 %v4603_v61, %v3875_v56  ;;  %v3941_v49 = vld [vmem:[%s6985_s3 + $0x1b0] sm:$0xf0]  ;;  %v4647_v52 = vld [vmem:[%s6985_s3 + $0x28c] sm:$0xf0]  ;;  %v4019_v61 = vld [vmem:[%s6985_s3 + $0x240] sm:$0xf] }
  0xd9   :  { %v3944_v55 = vor.u32 %v4617_v48, %v3941_v49  ;;  %v4052_v57 = vor.u32 %v4647_v52, %v4051_v51  ;;  %v4104_v48 = vor.u32 %v4657_v45, %v4101_v46 }
  0xdb   :  { %2425 = vmatpush.bf16.msrb.mxu2 %v4052_v57  ;;  %v4653_v57 = vld [vmem:[%s6985_s3 + $0x2c4] sm:$0xf] }
  0xdc   :  { %2400 = vmatpush.bf16.msrb.mxu3 %v3780_v58  ;;  %2413 = vmatpush.bf16.msrb.mxu1 %v3908_v0  ;;  %v4613_v58 = vld [vmem:[%s6985_s3 + $0x184] sm:$0xf]  ;;  %v4035_v0 = vld [vmem:[%s6985_s3 + $0x260] sm:$0xf] }
  0xdd   :  { %v3928_v7 = vor.u32 %v4613_v58, %v3925_v59  ;;  %v4036_v9 = vor.u32 %v4643_v39, %v4035_v0  ;;  %v4085_v58 = vld [vmem:[%s6985_s3 + $0x2d0] sm:$0xf0]  ;;  %v4592_v59 = vld [vmem:[%s6985_s3 + $0xd4] sm:$0xf0]  ;;  %v4691_v0 = vld [vmem:[%s6985_s3 + $0x3ec] sm:$0xf0] }
  0xdf   :  { %2426 = vmatpush.bf16.msrb.mxu2 %v4036_v9 }
  0xe0   :  { %2401 = vmatpush.bf16.msrb.mxu3 %v3764_v6  ;;  %2414 = vmatpush.bf16.msrb.mxu1 %v3892_v11  ;;  %v3781_v6 = vld [vmem:[%s6985_s3 + $0x70] sm:$0xf0] }
  0xe1   :  { %v3909_v11 = vld [vmem:[%s6985_s3 + $0x170] sm:$0xf0]  ;;  %v3784_v56 = vor.u32 %v4577_v5, %v3781_v6  ;;  %v3819_v5 = vld [vmem:[%s6985_s3 + $0xa8] sm:$0xf]  ;;  %v4649_v6 = vld [vmem:[%s6985_s3 + $0x2a4] sm:$0xf] }
  0xe2   :  { %v3912_v18 = vor.u32 %v4609_v10, %v3909_v11  ;;  %v4588_v10 = vld [vmem:[%s6985_s3 + $0xb4] sm:$0xf0] }
  0xe3   :  { %v1372_v60 = vpop.f32.mrf.mxu0 }
  0xe4   :  { %2402 = vmatpush.bf16.msrb.mxu3 %v3748_v12  ;;  %2415 = vmatpush.bf16.msrb.mxu1 %v3876_v8  ;;  %v4639_v12 = vld [vmem:[%s6985_s3 + $0x24c] sm:$0xf0]  ;;  %v1373_v36 = vadd.f32 %v1372_v60, %v1360_v26  ;;  %v4088_v60 = vor.u32 %v4653_v57, %v4085_v58  ;;  %v3963_v26 = vld [vmem:[%s6985_s3 + $0x1c8] sm:$0xf] }
  0xe5   :  { %v4020_v8 = vor.u32 %v4639_v12, %v4019_v61  ;;  %v4687_v61 = vld [vmem:[%s6985_s3 + $0x3cc] sm:$0xf0]  ;;  %v3755_v58 = vld [vmem:[%s6985_s3 + $0x28] sm:$0xf] }
  0xe6   :  { %v1385_v3 = vpop.f32.mrf.mxu1 }
  0xe7   :  { %2427 = vmatpush.bf16.msrb.mxu2 %v4020_v8  ;;  %v1386_v49 = vadd.f32 %v1385_v3, %v1373_v36  ;;  %v3836_v3 = vor.u32 %v4592_v59, %v3835_v33  ;;  %v4616_v33 = vld [vmem:[%s6985_s3 + $0x194] sm:$0xf0]  ;;  %v4633_v59 = vld [vmem:[%s6985_s3 + $0x224] sm:$0xf] }
  0xe8   :  { %2403 = vmatpush.bf16.msrb.mxu3 %v3732_v29  ;;  %2416 = vmatpush.bf16.msrb.mxu1 %v3860_v34  ;;  %v3749_v29 = vld [vmem:[%s6985_s3 + $0x30] sm:$0xf0]  ;;  %v4004_v34 = vor.u32 %v4635_v25, %v4003_v24  ;;  %v4683_v24 = vld [vmem:[%s6985_s3 + $0x3ac] sm:$0xf0] }
  0xe9   :  { %v3752_v40 = vor.u32 %v4569_v28, %v3749_v29  ;;  %v4624_v28 = vld [vmem:[%s6985_s3 + $0x1d4] sm:$0xf0] }
  0xea   :  { %v1398_v19 = vpop.f32.mrf.mxu3 }
  0xeb   :  { %2404 = vmatmul.bf16.vlgmr.msrb.gmra.mxu3 %v6176_v44  ;;  %v1374_v21 = vpop.f32.mrf.mxu0  ;;  %2428 = vmatpush.bf16.msrb.mxu2 %v4004_v34  ;;  %v1399_v52 = vadd.f32 %v1398_v19, %v1386_v49  ;;  %v3820_v19 = vor.u32 %v4588_v10, %v3819_v5  ;;  %v3787_v34 = vld [vmem:[%s6985_s3 + $0x68] sm:$0xf]  ;;  %v4576_v49 = vld [vmem:[%s6985_s3 + $0x54] sm:$0xf0]  ;;  %v4147_v5 = vld [vmem:[%s6985_s3 + $0x340] sm:$0xf] }
  0xec   :  { %2448 = vmatpush.bf16.msra.mxu3 %v3848_v31  ;;  %2461 = vmatpush.bf16.msra.mxu1 %v3976_v41  ;;  %v3733_v41 = vld [vmem:[%s6985_s3 + $0x10] sm:$0xf0]  ;;  %v3980_v21 = vor.u32 %v4628_v14, %v3979_v13  ;;  %v3772_v57 = vor.u32 %v4576_v49, %v3771_v32  ;;  %v4568_v13 = vld [vmem:[%s6985_s3 + $0x14] sm:$0xf0]  ;;  %v4629_v14 = vld [vmem:[%s6985_s3 + $0x204] sm:$0xf] }
  0xed   :  { %v1411_v22 = vpop.f32.mrf.mxu2  ;;  %v3821_v49 = vld [vmem:[%s6985_s3 + $0xb8] sm:$0xf0] }
  0xee   :  { %v1387_v31 = vpop.f32.mrf.mxu1  ;;  %v1412_v2 = vadd.f32 %v1411_v22, %v1399_v52  ;;  %v4053_v22 = vld [vmem:[%s6985_s3 + $0x290] sm:$0xf0]  ;;  %v4675_v52 = vld [vmem:[%s6985_s3 + $0x36c] sm:$0xf0] }
  0xef   :  { %v4056_v29 = vor.u32 %v4645_v1, %v4053_v22  ;;  %v4667_v1 = vld [vmem:[%s6985_s3 + $0x32c] sm:$0xf0]  ;;  %v4594_v22 = vld [vmem:[%s6985_s3 + $0xec] sm:$0xf] }
  0xf0   :  { %2449 = vmatpush.bf16.msra.mxu3 %v3832_v63  ;;  %2462 = vmatpush.bf16.msra.mxu1 %v3960_v37  ;;  %v3988_v63 = vor.u32 %v4631_v17, %v3987_v54  ;;  %v4597_v37 = vld [vmem:[%s6985_s3 + $0x104] sm:$0xf]  ;;  %v4040_v54 = vor.u32 %v4641_v35, %v4037_v15  ;;  %v4179_v17 = vld [vmem:[%s6985_s3 + $0x380] sm:$0xf] }
  0xf1   :  { %v4180_v45 = vor.u32 %v4679_v42, %v4179_v17  ;;  %v4689_v17 = vld [vmem:[%s6985_s3 + $0x3e4] sm:$0xf]  ;;  %v4229_v42 = vld [vmem:[%s6985_s3 + $0x3f0] sm:$0xf0] }
  0xf2   :  { %v1400_v47 = vpop.f32.mrf.mxu3  ;;  %2429 = vmatpush.bf16.msrb.mxu2 %v3988_v63  ;;  %v4620_v63 = vld [vmem:[%s6985_s3 + $0x1b4] sm:$0xf0] }
  0xf4   :  { %2450 = vmatpush.bf16.msra.mxu3 %v3816_v50  ;;  %2463 = vmatpush.bf16.msra.mxu1 %v3944_v55  ;;  %v3736_v50 = vor.u32 %v4565_v38, %v3733_v41  ;;  %v3864_v55 = vor.u32 %v4597_v37, %v3861_v27  ;;  %v4580_v41 = vld [vmem:[%s6985_s3 + $0x74] sm:$0xf0]  ;;  %v4637_v37 = vld [vmem:[%s6985_s3 + $0x244] sm:$0xf]  ;;  %v4021_v27 = vld [vmem:[%s6985_s3 + $0x250] sm:$0xf0] }
  0xf5   :  { %v1413_v51 = vpop.f32.mrf.mxu2  ;;  %v3788_v47 = vor.u32 %v4580_v41, %v3787_v34  ;;  %v4590_v34 = vld [vmem:[%s6985_s3 + $0xcc] sm:$0xf]  ;;  %v3837_v41 = vld [vmem:[%s6985_s3 + $0xd8] sm:$0xf0] }
  0xf6   :  { %2474 = vmatpush.bf16.msra.mxu2 %v4104_v48  ;;  %v4163_v51 = vld [vmem:[%s6985_s3 + $0x360] sm:$0xf]  ;;  %v3840_v32 = vor.u32 %v4590_v34, %v3837_v41  ;;  %v4669_v41 = vld [vmem:[%s6985_s3 + $0x344] sm:$0xf] }
  0xf8   :  { %2451 = vmatpush.bf16.msra.mxu3 %v3800_v62  ;;  %2464 = vmatpush.bf16.msra.mxu1 %v3928_v7  ;;  %v4227_v62 = vld [vmem:[%s6985_s3 + $0x3e0] sm:$0xf]  ;;  %v4069_v7 = vld [vmem:[%s6985_s3 + $0x2b0] sm:$0xf0] }
  0xf9   :  { %v4228_v39 = vor.u32 %v4691_v0, %v4227_v62  ;;  %v4072_v11 = vor.u32 %v4649_v6, %v4069_v7  ;;  %v4671_v6 = vld [vmem:[%s6985_s3 + $0x34c] sm:$0xf0]  ;;  %v3915_v7 = vld [vmem:[%s6985_s3 + $0x168] sm:$0xf] }
  0xfa   :  { %2475 = vmatpush.bf16.msra.mxu2 %v4088_v60  ;;  %v1424_v9 = vpop.f32.mrf.mxu3  ;;  %v4005_v60 = vld [vmem:[%s6985_s3 + $0x230] sm:$0xf0]  ;;  %v4148_v10 = vor.u32 %v4671_v6, %v4147_v5  ;;  %v4622_v5 = vld [vmem:[%s6985_s3 + $0x1cc] sm:$0xf]  ;;  %v3965_v6 = vld [vmem:[%s6985_s3 + $0x1d8] sm:$0xf0] }
  0xfb   :  { %2435 = vmatpush.bf16.msrb.mxu0 %v4228_v39  ;;  %v1425_v12 = vadd.f32 %v1424_v9, %v1412_v2  ;;  %v4572_v2 = vld [vmem:[%s6985_s3 + $0x34] sm:$0xf0] }
  0xfc   :  { %2452 = vmatpush.bf16.msra.mxu3 %v3784_v56  ;;  %2465 = vmatpush.bf16.msra.mxu1 %v3912_v18  ;;  %v4211_v56 = vld [vmem:[%s6985_s3 + $0x3c0] sm:$0xf]  ;;  %v3803_v18 = vld [vmem:[%s6985_s3 + $0x88] sm:$0xf]  ;;  %v4612_v9 = vld [vmem:[%s6985_s3 + $0x174] sm:$0xf0] }
  0xfd   :  { %v4212_v16 = vor.u32 %v4687_v61, %v4211_v56  ;;  %v1611_v8 = vmax.f32 %v1425_v12, 0.0  ;;  %v3804_v31 = vor.u32 %v4584_v20, %v3803_v18  ;;  %v3739_v56 = vld [vmem:[%s6985_s3 + $0x8] sm:$0xf]  ;;  %v3756_v12 = vor.u32 %v4572_v2, %v3755_v58  ;;  %v4131_v20 = vld [vmem:[%s6985_s3 + $0x320] sm:$0xf] }
  0xfe   :  { %2476 = vmatpush.bf16.msra.mxu2 %v4072_v11  ;;  %v3916_v18 = vor.u32 %v4612_v9, %v3915_v7  ;;  %v4197_v2 = vld [vmem:[%s6985_s3 + $0x3b0] sm:$0xf0] }
  0xff   :  { %2436 = vmatpush.bf16.msrb.mxu0 %v4212_v16  ;;  %v6363_v25 = vpack.c.bf16 %v1611_v8, %v1611_v8  ;;  %v3989_v16 = vld [vmem:[%s6985_s3 + $0x210] sm:$0xf0]  ;;  %v3899_v8 = vld [vmem:[%s6985_s3 + $0x148] sm:$0xf] }
 0x100   :  { %2453 = vmatpush.bf16.msra.mxu3 %v3768_v23  ;;  %2466 = vmatpush.bf16.msra.mxu1 %v3896_v30  ;;  %v4195_v23 = vld [vmem:[%s6985_s3 + $0x3a0] sm:$0xf] }
 0x101   :  { %v4196_v30 = vor.u32 %v4683_v24, %v4195_v23  ;;  %2417 = vmatmul.bf16.vlgmr.msrb.gmra.mxu1 %v6363_v25  ;;  %v3853_v23 = vld [vmem:[%s6985_s3 + $0xf8] sm:$0xf0]  ;;  %v4132_v24 = vor.u32 %v4667_v1, %v4131_v20  ;;  %v4574_v20 = vld [vmem:[%s6985_s3 + $0x4c] sm:$0xf] }
 0x102   :  { %v1426_v36 = vpop.f32.mrf.mxu3  ;;  %2477 = vmatpush.bf16.msra.mxu2 %v4056_v29  ;;  %v4604_v29 = vld [vmem:[%s6985_s3 + $0x134] sm:$0xf0]  ;;  %v3773_v1 = vld [vmem:[%s6985_s3 + $0x58] sm:$0xf0] }
 0x103   :  { %2437 = vmatpush.bf16.msrb.mxu0 %v4196_v30  ;;  %v4115_v36 = vld [vmem:[%s6985_s3 + $0x300] sm:$0xf] }
 0x104   :  { %2454 = vmatpush.bf16.msra.mxu3 %v3752_v40  ;;  %2467 = vmatpush.bf16.msra.mxu1 %v3880_v43  ;;  %v3964_v40 = vor.u32 %v4624_v28, %v3963_v26  ;;  %v3947_v43 = vld [vmem:[%s6985_s3 + $0x1a8] sm:$0xf]  ;;  %v6398_v46 = vpop.f32.mrf.mxu1  ;;  %v3740_v26 = vor.u32 %v4568_v13, %v3739_v56  ;;  %v4578_v56 = vld [vmem:[%s6985_s3 + $0x6c] sm:$0xf]  ;;  %v4181_v13 = vld [vmem:[%s6985_s3 + $0x390] sm:$0xf0] }
 0x105   :  { %v3948_v48 = vor.u32 %v4620_v63, %v3947_v43  ;;  %v3883_v28 = vld [vmem:[%s6985_s3 + $0x128] sm:$0xf]  ;;  %v256_v43 = vperm.slane %v6009_v4, 2 }
 0x106   :  { %2478 = vmatpush.bf16.msra.mxu2 %v4040_v54 }
 0x107   :  { %v6381_v38 = vpop.f32.mrf.mxu0  ;;  %2438 = vmatpush.bf16.msrb.mxu0 %v4180_v45  ;;  %v4232_v45 = vor.u32 %v4689_v17, %v4229_v42  ;;  %v4610_v42 = vld [vmem:[%s6985_s3 + $0x16c] sm:$0xf] }
 0x108   :  { %2455 = vmatpush.bf16.msra.mxu3 %v3736_v50  ;;  %2468 = vmatpush.bf16.msra.mxu1 %v3864_v55  ;;  %v4024_v50 = vor.u32 %v4637_v37, %v4021_v27  ;;  %v4164_v55 = vor.u32 %v4675_v52, %v4163_v51  ;;  %v3867_v37 = vld [vmem:[%s6985_s3 + $0x108] sm:$0xf]  ;;  %v4600_v27 = vld [vmem:[%s6985_s3 + $0x114] sm:$0xf0]  ;;  %v4213_v51 = vld [vmem:[%s6985_s3 + $0x3d0] sm:$0xf0]  ;;  %v1438_v52 = vadd.f32 %v6398_v46, %v256_v43 }
 0x109   :  { %v4582_v46 = vld [vmem:[%s6985_s3 + $0x8c] sm:$0xf]  ;;  %v3917_v43 = vld [vmem:[%s6985_s3 + $0x178] sm:$0xf0] }
 0x10a   :  { %2479 = vmatpush.bf16.msra.mxu2 %v4024_v50  ;;  %v4685_v50 = vld [vmem:[%s6985_s3 + $0x3c4] sm:$0xf] }
 0x10b   :  { %2456 = vmatmul.bf16.vlgmr.msra.gmra.mxu3 %v6176_v44  ;;  %2439 = vmatpush.bf16.msrb.mxu0 %v4164_v55  ;;  %v4216_v55 = vor.u32 %v4685_v50, %v4213_v51  ;;  %v4665_v50 = vld [vmem:[%s6985_s3 + $0x324] sm:$0xf]  ;;  %v4133_v51 = vld [vmem:[%s6985_s3 + $0x330] sm:$0xf0] }
 0x10c   :  { %2500 = vmatpush.bf16.msrb.mxu3 %v3852_v53  ;;  %2513 = vmatpush.bf16.msrb.mxu1 %v3980_v21  ;;  %v3931_v53 = vld [vmem:[%s6985_s3 + $0x188] sm:$0xf]  ;;  %v1439_v61 = vpop.f32.mrf.mxu1  ;;  %v4608_v21 = vld [vmem:[%s6985_s3 + $0x154] sm:$0xf0] }
 0x10d   :  { %v3932_v39 = vor.u32 %v4616_v33, %v3931_v53  ;;  %v6450_v11 = vpop.f32.mrf.mxu2  ;;  %v3900_v30 = vor.u32 %v4608_v21, %v3899_v8  ;;  %v4626_v53 = vld [vmem:[%s6985_s3 + $0x1ec] sm:$0xf]  ;;  %v3981_v33 = vld [vmem:[%s6985_s3 + $0x1f8] sm:$0xf0]  ;;  %v4673_v21 = vld [vmem:[%s6985_s3 + $0x364] sm:$0xf] }
 0x10e   :  { %v6433_v62 = vpop.f32.mrf.mxu3  ;;  %v3789_v61 = vld [vmem:[%s6985_s3 + $0x78] sm:$0xf0] }
 0x10f   :  { %v1465_v0 = vpop.f32.mrf.mxu0  ;;  %2440 = vmatpush.bf16.msrb.mxu0 %v4148_v10 }
 0x110   :  { %2501 = vmatpush.bf16.msrb.mxu3 %v3836_v3  ;;  %2514 = vmatpush.bf16.msrb.mxu1 %v3964_v40  ;;  %v4008_v3 = vor.u32 %v4633_v59, %v4005_v60  ;;  %v4663_v40 = vld [vmem:[%s6985_s3 + $0x30c] sm:$0xf0]  ;;  %v3984_v60 = vor.u32 %v4626_v53, %v3981_v33  ;;  %v3805_v0 = vld [vmem:[%s6985_s3 + $0x98] sm:$0xf0]  ;;  %v4606_v53 = vld [vmem:[%s6985_s3 + $0x14c] sm:$0xf] }
 0x111   :  { %2469 = vmatmul.bf16.vlgmr.msra.gmra.mxu1 %v6363_v25  ;;  %v4116_v54 = vor.u32 %v4663_v40, %v4115_v36  ;;  %v3808_v10 = vor.u32 %v4582_v46, %v3805_v0  ;;  %v3757_v40 = vld [vmem:[%s6985_s3 + $0x38] sm:$0xf0]  ;;  %v4656_v0 = vld [vmem:[%s6985_s3 + $0x2d4] sm:$0xf0] }
 0x112   :  { %2480 = vmatpush.bf16.msra.mxu2 %v4008_v3  ;;  %v1451_v3 = vadd.f32 %v6433_v62, %v1438_v52  ;;  %v3968_v62 = vor.u32 %v4622_v5, %v3965_v6  ;;  %v3901_v33 = vld [vmem:[%s6985_s3 + $0x158] sm:$0xf0]  ;;  %v4117_v5 = vld [vmem:[%s6985_s3 + $0x310] sm:$0xf0]  ;;  %v4602_v6 = vld [vmem:[%s6985_s3 + $0x12c] sm:$0xf] }
 0x113   :  { %2441 = vmatpush.bf16.msrb.mxu0 %v4132_v24  ;;  %v4614_v24 = vld [vmem:[%s6985_s3 + $0x18c] sm:$0xf] }
 0x114   :  { %2502 = vmatpush.bf16.msrb.mxu3 %v3820_v19  ;;  %2515 = vmatpush.bf16.msrb.mxu1 %v3948_v48  ;;  %v3992_v19 = vor.u32 %v4629_v14, %v3989_v16  ;;  %v4586_v48 = vld [vmem:[%s6985_s3 + $0xac] sm:$0xf]  ;;  %v1464_v14 = vadd.f32 %v6381_v38, %v1451_v3  ;;  %v4661_v3 = vld [vmem:[%s6985_s3 + $0x304] sm:$0xf] }
 0x115   :  { %v1478_v63 = vpop.f32.mrf.mxu2  ;;  %v3824_v58 = vor.u32 %v4586_v48, %v3821_v49  ;;  %v4618_v16 = vld [vmem:[%s6985_s3 + $0x1ac] sm:$0xf]  ;;  %v3920_v49 = vor.u32 %v4610_v42, %v3917_v43  ;;  %v4109_v43 = vld [vmem:[%s6985_s3 + $0x2f8] sm:$0xf0] }
 0x116   :  { %v1452_v35 = vpop.f32.mrf.mxu3  ;;  %2481 = vmatpush.bf16.msra.mxu2 %v3992_v19  ;;  %v3792_v19 = vor.u32 %v4578_v56, %v3789_v61  ;;  %v4566_v48 = vld [vmem:[%s6985_s3 + $0xc] sm:$0xf]  ;;  %v4652_v61 = vld [vmem:[%s6985_s3 + $0x2b4] sm:$0xf0] }
 0x117   :  { %v6492_v15 = vpop.f32.mrf.mxu0  ;;  %2442 = vmatpush.bf16.msrb.mxu0 %v4116_v54  ;;  %v4149_v54 = vld [vmem:[%s6985_s3 + $0x350] sm:$0xf0]  ;;  %v4658_v42 = vld [vmem:[%s6985_s3 + $0x2ec] sm:$0xf] }
 0x118   :  { %2503 = vmatpush.bf16.msrb.mxu3 %v3804_v31  ;;  %2516 = vmatpush.bf16.msrb.mxu1 %v3932_v39  ;;  %v3856_v31 = vor.u32 %v4594_v22, %v3853_v23  ;;  %v4681_v39 = vld [vmem:[%s6985_s3 + $0x3a4] sm:$0xf]  ;;  %v4165_v22 = vld [vmem:[%s6985_s3 + $0x370] sm:$0xf0]  ;;  %v1477_v23 = vadd.f32 %v6450_v11, %v1464_v14  ;;  %v4570_v11 = vld [vmem:[%s6985_s3 + $0x2c] sm:$0xf] }
 0x119   :  { %v4200_v7 = vor.u32 %v4681_v39, %v4197_v2  ;;  %v3904_v39 = vor.u32 %v4606_v53, %v3901_v33  ;;  %v3869_v14 = vld [vmem:[%s6985_s3 + $0x118] sm:$0xf0] }
 0x11b   :  { %2487 = vmatpush.bf16.msra.mxu0 %v4232_v45  ;;  %v4152_v45 = vor.u32 %v4669_v41, %v4149_v54  ;;  %v3995_v41 = vld [vmem:[%s6985_s3 + $0x208] sm:$0xf]  ;;  %v4632_v54 = vld [vmem:[%s6985_s3 + $0x214] sm:$0xf0] }
 0x11c   :  { %2504 = vmatpush.bf16.msrb.mxu3 %v3788_v47  ;;  %2517 = vmatpush.bf16.msrb.mxu1 %v3916_v18  ;;  %v3884_v47 = vor.u32 %v4604_v29, %v3883_v28  ;;  %v3949_v18 = vld [vmem:[%s6985_s3 + $0x1b8] sm:$0xf0]  ;;  %v4168_v29 = vor.u32 %v4673_v21, %v4165_v22 }
 0x11d   :  { %v3952_v38 = vor.u32 %v4618_v16, %v3949_v18  ;;  %v4059_v18 = vld [vmem:[%s6985_s3 + $0x288] sm:$0xf] }
 0x11f   :  { %v1517_v59 = vpop.f32.mrf.mxu0  ;;  %2488 = vmatpush.bf16.msra.mxu0 %v4216_v55 }
 0x120   :  { %2505 = vmatpush.bf16.msrb.mxu3 %v3772_v57  ;;  %2518 = vmatpush.bf16.msrb.mxu1 %v3900_v30  ;;  %v3868_v57 = vor.u32 %v4600_v27, %v3867_v37  ;;  %v4107_v37 = vld [vmem:[%s6985_s3 + $0x2e8] sm:$0xf]  ;;  %v4660_v27 = vld [vmem:[%s6985_s3 + $0x2f4] sm:$0xf0] }
 0x123   :  { %2489 = vmatpush.bf16.msra.mxu0 %v4200_v7  ;;  %v3885_v7 = vld [vmem:[%s6985_s3 + $0x138] sm:$0xf0] }
 0x124   :  { %2506 = vmatpush.bf16.msrb.mxu3 %v3756_v12  ;;  %2519 = vmatpush.bf16.msrb.mxu1 %v3884_v47  ;;  %v1489_v9 = vpop.f32.mrf.mxu1  ;;  %v4677_v12 = vld [vmem:[%s6985_s3 + $0x384] sm:$0xf] }
 0x125   :  { %v4184_v8 = vor.u32 %v4677_v12, %v4181_v13  ;;  %v1490_v30 = vadd.f32 %v1489_v9, %v1477_v23  ;;  %v3888_v12 = vor.u32 %v4602_v6, %v3885_v7  ;;  %v4598_v13 = vld [vmem:[%s6985_s3 + $0x10c] sm:$0xf]  ;;  %v4061_v6 = vld [vmem:[%s6985_s3 + $0x298] sm:$0xf0]  ;;  %v4203_v7 = vld [vmem:[%s6985_s3 + $0x3a8] sm:$0xf] }
 0x127   :  { %2490 = vmatpush.bf16.msra.mxu0 %v4184_v8  ;;  %v4648_v8 = vld [vmem:[%s6985_s3 + $0x294] sm:$0xf0] }
 0x128   :  { %2507 = vmatpush.bf16.msrb.mxu3 %v3740_v26  ;;  %2520 = vmatpush.bf16.msrb.mxu1 %v3868_v57  ;;  %v3933_v26 = vld [vmem:[%s6985_s3 + $0x198] sm:$0xf0]  ;;  %v4136_v57 = vor.u32 %v4665_v50, %v4133_v51  ;;  %v4235_v50 = vld [vmem:[%s6985_s3 + $0x3e8] sm:$0xf]  ;;  %v4692_v51 = vld [vmem:[%s6985_s3 + $0x3f4] sm:$0xf0] }
 0x129   :  { %v3936_v36 = vor.u32 %v4614_v24, %v3933_v26  ;;  %v4640_v24 = vld [vmem:[%s6985_s3 + $0x254] sm:$0xf0] }
 0x12b   :  { %2508 = vmatmul.bf16.vlgmr.msrb.gmra.mxu3 %v6176_v44  ;;  %2521 = vmatmul.bf16.vlgmr.msrb.gmra.mxu1 %v6363_v25  ;;  %v6594_v28 = vpop.f32.mrf.mxu0 }
 0x12c   :  { %2552 = vmatpush.bf16.msra.mxu3 %v3856_v31  ;;  %2565 = vmatpush.bf16.msra.mxu1 %v3984_v60  ;;  %v3776_v31 = vor.u32 %v4574_v20, %v3773_v1  ;;  %v1491_v34 = vpop.f32.mrf.mxu1  ;;  %v4091_v60 = vld [vmem:[%s6985_s3 + $0x2c8] sm:$0xf]  ;;  %v3872_v20 = vor.u32 %v4598_v13, %v3869_v14  ;;  %v4680_v13 = vld [vmem:[%s6985_s3 + $0x394] sm:$0xf0] }
 0x12d   :  { %v1528_v63 = vpop.f32.mrf.mxu2  ;;  %2491 = vmatpush.bf16.msra.mxu0 %v4168_v29  ;;  %v4092_v56 = vor.u32 %v4656_v0, %v4091_v60  ;;  %v4043_v1 = vld [vmem:[%s6985_s3 + $0x268] sm:$0xf]  ;;  %v4688_v0 = vld [vmem:[%s6985_s3 + $0x3d4] sm:$0xf0] }
 0x12e   :  { %v1502_v35 = vpop.f32.mrf.mxu3  ;;  %v4219_v60 = vld [vmem:[%s6985_s3 + $0x3c8] sm:$0xf] }
 0x12f   :  { %v1503_v17 = vadd.f32 %v1502_v35, %v1490_v30 }
 0x130   :  { %2553 = vmatpush.bf16.msra.mxu3 %v3840_v32  ;;  %2566 = vmatpush.bf16.msra.mxu1 %v3968_v62  ;;  %v3760_v32 = vor.u32 %v4570_v11, %v3757_v40  ;;  %v4075_v62 = vld [vmem:[%s6985_s3 + $0x2a8] sm:$0xf] }
 0x131   :  { %v1516_v47 = vadd.f32 %v6492_v15, %v1503_v17  ;;  %v3741_v15 = vld [vmem:[%s6985_s3 + $0x18] sm:$0xf0]  ;;  %2492 = vmatpush.bf16.msra.mxu0 %v4152_v45  ;;  %v4076_v16 = vor.u32 %v4652_v61, %v4075_v62  ;;  %v4642_v62 = vld [vmem:[%s6985_s3 + $0x26c] sm:$0xf] }
 0x132   :  { %v3744_v59 = vor.u32 %v4566_v48, %v3741_v15  ;;  %v4093_v48 = vld [vmem:[%s6985_s3 + $0x2d8] sm:$0xf0] }
 0x133   :  { %v1612_v52 = vmax.f32 %v1516_v47, 0.0  ;;  %v1543_v55 = vpop.f32.mrf.mxu0  ;;  %v3996_v47 = vor.u32 %v4632_v54, %v3995_v41  ;;  %v4045_v61 = vld [vmem:[%s6985_s3 + $0x278] sm:$0xf0] }
 0x134   :  { %2554 = vmatpush.bf16.msra.mxu3 %v3824_v58  ;;  %2567 = vmatpush.bf16.msra.mxu1 %v3952_v38  ;;  %v4108_v58 = vor.u32 %v4660_v27, %v4107_v37  ;;  %v4060_v38 = vor.u32 %v4648_v8, %v4059_v18  ;;  %v4654_v27 = vld [vmem:[%s6985_s3 + $0x2cc] sm:$0xf]  ;;  %v4236_v55 = vor.u32 %v4692_v51, %v4235_v50  ;;  %v4029_v8 = vld [vmem:[%s6985_s3 + $0x258] sm:$0xf0] }
 0x135   :  { %v6639_v46 = vpack.c.bf16 %v1612_v52, %v1612_v52  ;;  %v1530_v9 = vpop.f32.mrf.mxu2  ;;  %2493 = vmatpush.bf16.msra.mxu0 %v4136_v57  ;;  %v4096_v33 = vor.u32 %v4654_v27, %v4093_v48  ;;  %v4650_v57 = vld [vmem:[%s6985_s3 + $0x2ac] sm:$0xf]  ;;  %v4048_v14 = vor.u32 %v4642_v62, %v4045_v61  ;;  %v4237_v41 = vld [vmem:[%s6985_s3 + $0x3f8] sm:$0xf0]  ;;  %v6837_v27 = vld [vmem:[%s6986_s4] sm:$0xf] }
 0x136   :  { %v1504_v2 = vpop.f32.mrf.mxu3  ;;  %v4684_v9 = vld [vmem:[%s6985_s3 + $0x3b4] sm:$0xf0]  ;;  %v4638_v18 = vld [vmem:[%s6985_s3 + $0x24c] sm:$0xf]  ;;  %v4173_v50 = vld [vmem:[%s6985_s3 + $0x378] sm:$0xf0] }
 0x137   :  { %2430 = vmatmul.bf16.vlgmr.msrb.gmra.mxu2 %v6639_v46 }
 0x138   :  { %2555 = vmatpush.bf16.msra.mxu3 %v3808_v10  ;;  %2568 = vmatpush.bf16.msra.mxu1 %v3936_v36  ;;  %v4120_v10 = vor.u32 %v4661_v3, %v4117_v5  ;;  %v4220_v3 = vor.u32 %v4688_v0, %v4219_v60  ;;  %v4646_v5 = vld [vmem:[%s6985_s3 + $0x28c] sm:$0xf] }
 0x139   :  { %2526 = vmatpush.bf16.msrb.mxu2 %v4108_v58  ;;  %v4077_v58 = vld [vmem:[%s6985_s3 + $0x2b8] sm:$0xf0]  ;;  %v4666_v0 = vld [vmem:[%s6985_s3 + $0x32c] sm:$0xf] }
 0x13a   :  { %2494 = vmatpush.bf16.msra.mxu0 %v4120_v10  ;;  %v4064_v10 = vor.u32 %v4646_v5, %v4061_v6  ;;  %v4125_v5 = vld [vmem:[%s6985_s3 + $0x318] sm:$0xf0] }
 0x13c   :  { %2556 = vmatpush.bf16.msra.mxu3 %v3792_v19  ;;  %2569 = vmatpush.bf16.msra.mxu1 %v3920_v49  ;;  %v257_v19 = vperm.slane %v6009_v4, 3  ;;  %v4027_v4 = vld [vmem:[%s6985_s3 + $0x248] sm:$0xf] }
 0x13d   :  { %2527 = vmatpush.bf16.msrb.mxu2 %v4092_v56  ;;  %v4028_v30 = vor.u32 %v4640_v24, %v4027_v4  ;;  %v4204_v56 = vor.u32 %v4684_v9, %v4203_v7 }
 0x13e   :  { %v1529_v21 = vadd.f32 %v1528_v63, %v257_v19  ;;  %v4171_v19 = vld [vmem:[%s6985_s3 + $0x368] sm:$0xf] }
 0x140   :  { %2557 = vmatpush.bf16.msra.mxu3 %v3776_v31  ;;  %2570 = vmatpush.bf16.msra.mxu1 %v3904_v39  ;;  %v1542_v26 = vadd.f32 %v6594_v28, %v1529_v21  ;;  %v4011_v31 = vld [vmem:[%s6985_s3 + $0x228] sm:$0xf]  ;;  %v4080_v39 = vor.u32 %v4650_v57, %v4077_v58  ;;  %v4013_v21 = vld [vmem:[%s6985_s3 + $0x238] sm:$0xf0] }
 0x141   :  { %2528 = vmatpush.bf16.msrb.mxu2 %v4076_v16 }
 0x144   :  { %2558 = vmatpush.bf16.msra.mxu3 %v3760_v32  ;;  %2571 = vmatpush.bf16.msra.mxu1 %v3888_v12  ;;  %v1554_v22 = vpop.f32.mrf.mxu1  ;;  %v4112_v32 = vor.u32 %v4658_v42, %v4109_v43  ;;  %v4187_v12 = vld [vmem:[%s6985_s3 + $0x388] sm:$0xf]  ;;  %v4686_v42 = vld [vmem:[%s6985_s3 + $0x3cc] sm:$0xf]  ;;  %v4221_v43 = vld [vmem:[%s6985_s3 + $0x3d8] sm:$0xf0] }
 0x145   :  { %2529 = vmatpush.bf16.msrb.mxu2 %v4060_v38  ;;  %v1555_v34 = vadd.f32 %v1554_v22, %v1542_v26  ;;  %v4188_v16 = vor.u32 %v4680_v13, %v4187_v12  ;;  %v4032_v38 = vor.u32 %v4638_v18, %v4029_v8  ;;  %v4155_v22 = vld [vmem:[%s6985_s3 + $0x348] sm:$0xf]  ;;  %v4700_v12 = vld [vmem:[%s6987_s5 + $0x38] sm:$0xff] }
 0x147   :  { %2482 = vmatmul.bf16.vlgmr.msra.gmra.mxu2 %v6639_v46 }
 0x148   :  { %2559 = vmatpush.bf16.msra.mxu3 %v3744_v59  ;;  %2572 = vmatpush.bf16.msra.mxu1 %v3872_v20  ;;  %v4676_v20 = vld [vmem:[%s6985_s3 + $0x374] sm:$0xf0] }
 0x14a   :  { %v1593_v29 = vpop.f32.mrf.mxu0 }
 0x14b   :  { %2560 = vmatmul.bf16.vlgmr.msra.gmra.mxu3 %v6176_v44  ;;  %v4644_v44 = vld [vmem:[%s6985_s3 + $0x274] sm:$0xf0]  ;;  %2573 = vmatmul.bf16.vlgmr.msra.gmra.mxu1 %v6363_v25 }
 0x14c   :  { %v4044_v23 = vor.u32 %v4644_v44, %v4043_v1  ;;  %v4636_v25 = vld [vmem:[%s6985_s3 + $0x234] sm:$0xf0]  ;;  %v1556_v11 = vpop.f32.mrf.mxu1  ;;  %v4172_v1 = vor.u32 %v4676_v20, %v4171_v19  ;;  %v4634_v44 = vld [vmem:[%s6985_s3 + $0x22c] sm:$0xf]  ;;  %2872 = vmatpush.bf16.msrb.mxu3 %v4700_v12 }
 0x14d   :  { %v1580_v40 = vpop.f32.mrf.mxu2  ;;  %v4012_v28 = vor.u32 %v4636_v25, %v4011_v31  ;;  %v4016_v24 = vor.u32 %v4634_v44, %v4013_v21  ;;  %v4139_v31 = vld [vmem:[%s6985_s3 + $0x328] sm:$0xf]  ;;  %v4668_v25 = vld [vmem:[%s6985_s3 + $0x334] sm:$0xf0] }
 0x14e   :  { %2530 = vmatpush.bf16.msrb.mxu2 %v4044_v23  ;;  %v1567_v35 = vpop.f32.mrf.mxu3  ;;  %v4672_v23 = vld [vmem:[%s6985_s3 + $0x354] sm:$0xf0]  ;;  %v4140_v11 = vor.u32 %v4668_v25, %v4139_v31  ;;  %v4698_v19 = vld [vmem:[%s6987_s5 + $0x28] sm:$0xff]  ;;  %v1751_v25 = vperm.slane %v6837_v27, 3 }
 0x14f   :  { %v1568_v36 = vadd.f32 %v1567_v35, %v1555_v34  ;;  %v4156_v26 = vor.u32 %v4672_v23, %v4155_v22  ;;  %v4123_v35 = vld [vmem:[%s6985_s3 + $0x308] sm:$0xf]  ;;  %v4696_v44 = vld [vmem:[%s6987_s5 + $0x18] sm:$0xff]  ;;  %v4695_v23 = vld [vmem:[%s6987_s5 + $0x10] sm:$0xff] }
 0x150   :  { %v4708_v21 = vld [vmem:[%s6987_s5 + $0x78] sm:$0xff] }
 0x151   :  { %v1581_v17 = vadd.f32 %v1580_v40, %v1568_v36  ;;  %v4664_v36 = vld [vmem:[%s6985_s3 + $0x314] sm:$0xf0]  ;;  %2885 = vmatpush.bf16.msrb.mxu1 %v4708_v21 }
 0x152   :  { %2531 = vmatpush.bf16.msrb.mxu2 %v4028_v30  ;;  %v1595_v63 = vpop.f32.mrf.mxu0  ;;  %v3997_v30 = vld [vmem:[%s6985_s3 + $0x218] sm:$0xf0]  ;;  %v4124_v54 = vor.u32 %v4664_v36, %v4123_v35 }
 0x153   :  { %v1594_v45 = vadd.f32 %v1593_v29, %v1581_v17  ;;  %v4630_v29 = vld [vmem:[%s6985_s3 + $0x20c] sm:$0xf]  ;;  %v4224_v63 = vor.u32 %v4686_v42, %v4221_v43 }
 0x154   :  { %v1606_v37 = vpop.f32.mrf.mxu1  ;;  %v4000_v34 = vor.u32 %v4630_v29, %v3997_v30  ;;  %v4693_v29 = vld [vmem:[%s6987_s5] sm:$0xff]  ;;  %v4702_v42 = vld [vmem:[%s6987_s5 + $0x48] sm:$0xff] }
 0x155   :  { %v1607_v49 = vadd.f32 %v1606_v37, %v1594_v45  ;;  %v1582_v52 = vpop.f32.mrf.mxu2  ;;  %v4682_v45 = vld [vmem:[%s6985_s3 + $0x3ac] sm:$0xf]  ;;  %v4189_v37 = vld [vmem:[%s6985_s3 + $0x398] sm:$0xf0]  ;;  %v4705_v30 = vld [vmem:[%s6987_s5 + $0x60] sm:$0xff] }
 0x156   :  { %2532 = vmatpush.bf16.msrb.mxu2 %v4012_v28  ;;  %v1569_v15 = vpop.f32.mrf.mxu3  ;;  %v4690_v28 = vld [vmem:[%s6985_s3 + $0x3ec] sm:$0xf] }
 0x157   :  { %v1613_v53 = vmax.f32 %v1607_v49, 0.0  ;;  %v4240_v17 = vor.u32 %v4690_v28, %v4237_v41  ;;  %v1748_v49 = vperm.slane %v6837_v27, 0  ;;  %v4674_v15 = vld [vmem:[%s6985_s3 + $0x36c] sm:$0xf]  ;;  %v4715_v28 = vld [vmem:[%s6987_s5 + $0xb0] sm:$0xff] }
 0x158   :  { %v4176_v51 = vor.u32 %v4674_v15, %v4173_v50  ;;  %v4714_v43 = vld [vmem:[%s6987_s5 + $0xa8] sm:$0xff] }
 0x159   :  { %v6731_v59 = vpack.c.bf16 %v1613_v53, %v1613_v53  ;;  %v4670_v53 = vld [vmem:[%s6985_s3 + $0x34c] sm:$0xf] }
 0x15a   :  { %2533 = vmatpush.bf16.msrb.mxu2 %v3996_v47  ;;  %v4205_v47 = vld [vmem:[%s6985_s3 + $0x3b8] sm:$0xf0]  ;;  %v4710_v15 = vld [vmem:[%s6987_s5 + $0x88] sm:$0xff] }
 0x15b   :  { %2443 = vmatmul.bf16.vlgmr.msrb.gmra.mxu0 %v6731_v59 }
 0x15c   :  { %2539 = vmatpush.bf16.msrb.mxu0 %v4236_v55  ;;  %v1608_v2 = vpop.f32.mrf.mxu1 }
 0x15d   :  { %2534 = vmatmul.bf16.vlgmr.msrb.gmra.mxu2 %v6639_v46 }
 0x15e   :  { %2578 = vmatpush.bf16.msra.mxu2 %v4112_v32  ;;  %v4678_v32 = vld [vmem:[%s6985_s3 + $0x38c] sm:$0xf] }
 0x15f   :  { %v4192_v48 = vor.u32 %v4678_v32, %v4189_v37  ;;  %v4712_v37 = vld [vmem:[%s6987_s5 + $0x98] sm:$0xff] }
 0x160   :  { %2540 = vmatpush.bf16.msrb.mxu0 %v4220_v3  ;;  %v4662_v3 = vld [vmem:[%s6985_s3 + $0x30c] sm:$0xf] }
 0x161   :  { %v4128_v9 = vor.u32 %v4662_v3, %v4125_v5 }
 0x162   :  { %2579 = vmatpush.bf16.msra.mxu2 %v4096_v33  ;;  %v4157_v33 = vld [vmem:[%s6985_s3 + $0x358] sm:$0xf0] }
 0x163   :  { %v4160_v60 = vor.u32 %v4670_v53, %v4157_v33  ;;  %v4709_v53 = vld [vmem:[%s6987_s5 + $0x80] sm:$0xff]  ;;  %v4724_v33 = vld [vmem:[%s6987_s5 + $0xf8] sm:$0xff] }
 0x164   :  { %2541 = vmatpush.bf16.msrb.mxu0 %v4204_v56 }
 0x166   :  { %2580 = vmatpush.bf16.msra.mxu2 %v4080_v39  ;;  %v4141_v39 = vld [vmem:[%s6985_s3 + $0x338] sm:$0xf0] }
 0x167   :  { %v4144_v2 = vor.u32 %v4666_v0, %v4141_v39  ;;  %v4722_v0 = vld [vmem:[%s6987_s5 + $0xe8] sm:$0xff] }
 0x168   :  { %2542 = vmatpush.bf16.msrb.mxu0 %v4188_v16  ;;  %v4699_v16 = vld [vmem:[%s6987_s5 + $0x30] sm:$0xff] }
 0x169   :  { %2873 = vmatpush.bf16.msrb.mxu3 %v4699_v16 }
 0x16a   :  { %2581 = vmatpush.bf16.msra.mxu2 %v4064_v10  ;;  %v1749_v10 = vperm.slane %v6837_v27, 1 }
 0x16b   :  { %2495 = vmatmul.bf16.vlgmr.msra.gmra.mxu0 %v6731_v59 }
 0x16c   :  { %2543 = vmatpush.bf16.msrb.mxu0 %v4172_v1 }
 0x16d   :  { %2874 = vmatpush.bf16.msrb.mxu3 %v4698_v19 }
 0x16e   :  { %2582 = vmatpush.bf16.msra.mxu2 %v4048_v14  ;;  %v2405_v4 = vpop.f32.mrf.mxu3  ;;  %v1750_v14 = vperm.slane %v6837_v27, 2  ;;  %v4711_v27 = vld [vmem:[%s6987_s5 + $0x90] sm:$0xff] }
 0x16f   :  { %v2406_v52 = vadd.f32 %v2405_v4, %v1748_v49  ;;  %v4707_v4 = vld [vmem:[%s6987_s5 + $0x70] sm:$0xff] }
 0x170   :  { %2544 = vmatpush.bf16.msrb.mxu0 %v4156_v26  ;;  %2886 = vmatpush.bf16.msrb.mxu1 %v4707_v4  ;;  %v4706_v26 = vld [vmem:[%s6987_s5 + $0x68] sm:$0xff] }
 0x172   :  { %2583 = vmatpush.bf16.msra.mxu2 %v4032_v38  ;;  %v4697_v38 = vld [vmem:[%s6987_s5 + $0x20] sm:$0xff] }
 0x173   :  { %2875 = vmatpush.bf16.msrb.mxu3 %v4697_v38 }
 0x174   :  { %2545 = vmatpush.bf16.msrb.mxu0 %v4140_v11  ;;  %2887 = vmatpush.bf16.msrb.mxu1 %v4706_v26  ;;  %v4716_v11 = vld [vmem:[%s6987_s5 + $0xb8] sm:$0xff] }
 0x176   :  { %2584 = vmatpush.bf16.msra.mxu2 %v4016_v24  ;;  %v2407_v40 = vpop.f32.mrf.mxu3  ;;  %v4694_v24 = vld [vmem:[%s6987_s5 + $0x8] sm:$0xff] }
 0x177   :  { %2876 = vmatpush.bf16.msrb.mxu3 %v4696_v44  ;;  %v4703_v40 = vld [vmem:[%s6987_s5 + $0x50] sm:$0xff] }
 0x178   :  { %2546 = vmatpush.bf16.msrb.mxu0 %v4124_v54  ;;  %2888 = vmatpush.bf16.msrb.mxu1 %v4705_v30 }
 0x17a   :  { %2585 = vmatpush.bf16.msra.mxu2 %v4000_v34  ;;  %v4704_v34 = vld [vmem:[%s6987_s5 + $0x58] sm:$0xff] }
 0x17b   :  { %2547 = vmatmul.bf16.vlgmr.msrb.gmra.mxu0 %v6731_v59  ;;  %2877 = vmatpush.bf16.msrb.mxu3 %v4695_v23 }
 0x17c   :  { %2591 = vmatpush.bf16.msra.mxu0 %v4240_v17  ;;  %2889 = vmatpush.bf16.msrb.mxu1 %v4704_v34 }
 0x17d   :  { %2586 = vmatmul.bf16.vlgmr.msra.gmra.mxu2 %v6639_v46  ;;  %v4208_v46 = vor.u32 %v4682_v45, %v4205_v47  ;;  %v4701_v45 = vld [vmem:[%s6987_s5 + $0x40] sm:$0xff] }
 0x17e   :  { %v2418_v55 = vpop.f32.mrf.mxu1  ;;  %2898 = vmatpush.bf16.msrb.mxu2 %v4716_v11  ;;  %v4713_v47 = vld [vmem:[%s6987_s5 + $0xa0] sm:$0xff] }
 0x17f   :  { %v6852_v58 = vadd.f32 %v2418_v55, %v2406_v52  ;;  %2878 = vmatpush.bf16.msrb.mxu3 %v4694_v24 }
 0x180   :  { %2592 = vmatpush.bf16.msra.mxu0 %v4224_v63  ;;  %2890 = vmatpush.bf16.msrb.mxu1 %v4703_v40 }
 0x182   :  { %2899 = vmatpush.bf16.msrb.mxu2 %v4715_v28 }
 0x183   :  { %2879 = vmatpush.bf16.msrb.mxu3 %v4693_v29 }
 0x184   :  { %2593 = vmatpush.bf16.msra.mxu0 %v4208_v46  ;;  %2891 = vmatpush.bf16.msrb.mxu1 %v4702_v42 }
 0x186   :  { %v2420_v6 = vpop.f32.mrf.mxu1  ;;  %2900 = vmatpush.bf16.msrb.mxu2 %v4714_v43 }
 0x188   :  { %2594 = vmatpush.bf16.msra.mxu0 %v4192_v48  ;;  %2892 = vmatpush.bf16.msrb.mxu1 %v4701_v45 }
 0x18a   :  { %2901 = vmatpush.bf16.msrb.mxu2 %v4713_v47 }
 0x18c   :  { %2595 = vmatpush.bf16.msra.mxu0 %v4176_v51 }
 0x18e   :  { %v2457_v57 = vpop.f32.mrf.mxu3  ;;  %v2470_v62 = vpop.f32.mrf.mxu1  ;;  %2902 = vmatpush.bf16.msrb.mxu2 %v4712_v37 }
 0x18f   :  { %v2458_v56 = vadd.f32 %v2457_v57, %v1749_v10 }
 0x190   :  { %2596 = vmatpush.bf16.msra.mxu0 %v4160_v60 }
 0x191   :  { %v6867_v61 = vadd.f32 %v2470_v62, %v2458_v56  ;;  %v4719_v56 = vld [vmem:[%s6987_s5 + $0xd0] sm:$0xff] }
 0x192   :  { %2903 = vmatpush.bf16.msrb.mxu2 %v4711_v27 }
 0x194   :  { %2597 = vmatpush.bf16.msra.mxu0 %v4144_v2  ;;  %v4721_v2 = vld [vmem:[%s6987_s5 + $0xe0] sm:$0xff] }
 0x196   :  { %v2459_v7 = vpop.f32.mrf.mxu3  ;;  %v2472_v13 = vpop.f32.mrf.mxu1  ;;  %2904 = vmatpush.bf16.msrb.mxu2 %v4710_v15 }
 0x197   :  { %v4720_v7 = vld [vmem:[%s6987_s5 + $0xd8] sm:$0xff]  ;;  %v4717_v13 = vld [vmem:[%s6987_s5 + $0xc0] sm:$0xff] }
 0x198   :  { %2598 = vmatpush.bf16.msra.mxu0 %v4128_v9 }
 0x19a   :  { %2905 = vmatpush.bf16.msrb.mxu2 %v4709_v53 }
 0x19b   :  { %2599 = vmatmul.bf16.vlgmr.msra.gmra.mxu0 %v6731_v59 }
 0x19c   :  { %2911 = vmatpush.bf16.msrb.mxu0 %v4724_v33 }
 0x1a8   :  { %v2522_v59 = vpop.f32.mrf.mxu1 }
 0x1ae   :  { %v2509_v18 = vpop.f32.mrf.mxu3 }
 0x1af   :  { %v2510_v8 = vadd.f32 %v2509_v18, %v1750_v14 }
 0x1b0   :  { %v2524_v22 = vpop.f32.mrf.mxu1 }
 0x1b1   :  { %v6880_v20 = vadd.f32 %v2522_v59, %v2510_v8 }
 0x1b6   :  { %v2511_v1 = vpop.f32.mrf.mxu3 }
 0x1ba   :  { %v2431_v31 = vpop.f32.mrf.mxu2 }
 0x1bb   :  { %v2432_v49 = vadd.f32 %v2431_v31, %v6852_v58  ;;  %v4723_v58 = vld [vmem:[%s6987_s5 + $0xf0] sm:$0xff] }
 0x1bc   :  { %2912 = vmatpush.bf16.msrb.mxu0 %v4723_v58 }
 0x1c0   :  { %2913 = vmatpush.bf16.msrb.mxu0 %v4722_v0 }
 0x1c2   :  { %v2433_v54 = vpop.f32.mrf.mxu2 }
 0x1c4   :  { %2914 = vmatpush.bf16.msrb.mxu0 %v4721_v2 }
 0x1c8   :  { %v2574_v41 = vpop.f32.mrf.mxu1  ;;  %2915 = vmatpush.bf16.msrb.mxu0 %v4720_v7 }
 0x1ca   :  { %v2483_v32 = vpop.f32.mrf.mxu2 }
 0x1cb   :  { %v2484_v3 = vadd.f32 %v2483_v32, %v6867_v61  ;;  %v4718_v61 = vld [vmem:[%s6987_s5 + $0xc8] sm:$0xff] }
 0x1cc   :  { %2916 = vmatpush.bf16.msrb.mxu0 %v4719_v56 }
 0x1ce   :  { %v2561_v35 = vpop.f32.mrf.mxu3 }
 0x1cf   :  { %v2562_v36 = vadd.f32 %v2561_v35, %v1751_v25  ;;  %v4726_v25 = vld [vmem:[%s6988_s6] ss:$0 sm:$0xff] }
 0x1d0   :  { %v2576_v46 = vpop.f32.mrf.mxu1  ;;  %2917 = vmatpush.bf16.msrb.mxu0 %v4718_v61 }
 0x1d1   :  { %v6922_v17 = vadd.f32 %v2574_v41, %v2562_v36 }
 0x1d2   :  { %v2485_v48 = vpop.f32.mrf.mxu2 }
 0x1d4   :  { %2918 = vmatpush.bf16.msrb.mxu0 %v4717_v13 }
 0x1d6   :  { %v2563_v63 = vpop.f32.mrf.mxu3 }
 0x1d8   :  { %v2444_v50 = vpop.f32.mrf.mxu0 }
 0x1d9   :  { %v2445_v51 = vadd.f32 %v2444_v50, %v2432_v49 }
 0x1db   :  { %v2604_v52 = vmax.f32 %v2445_v51, 0.0 }
 0x1dd   :  { %v2608_v57 = vpack.c.bf16 %v2604_v52, %v2604_v52 }
 0x1df   :  { %2880 = vmatmul.bf16.vlgmr.msrb.gmra.mxu3 %v2608_v57 }
 0x1e0   :  { %v2535_v55 = vpop.f32.mrf.mxu2  ;;  %v2446_v60 = vpop.f32.mrf.mxu0 }
 0x1e1   :  { %v2536_v12 = vadd.f32 %v2535_v55, %v6880_v20 }
 0x1e8   :  { %v2537_v39 = vpop.f32.mrf.mxu2  ;;  %v2496_v5 = vpop.f32.mrf.mxu0 }
 0x1e9   :  { %v2497_v6 = vadd.f32 %v2496_v5, %v2484_v3 }
 0x1eb   :  { %v2605_v9 = vmax.f32 %v2497_v6, 0.0 }
 0x1ed   :  { %v2609_v10 = vpack.c.bf16 %v2605_v9, %v2605_v9 }
 0x1ef   :  { %2893 = vmatmul.bf16.vlgmr.msrb.gmra.mxu1 %v2609_v10 }
 0x1f0   :  { %v2498_v62 = vpop.f32.mrf.mxu0 }
 0x1f8   :  { %v2548_v14 = vpop.f32.mrf.mxu0 }
 0x1f9   :  { %v2549_v16 = vadd.f32 %v2548_v14, %v2536_v12 }
 0x1fb   :  { %v2606_v8 = vmax.f32 %v2549_v16, 0.0 }
 0x1fd   :  { %v2610_v19 = vpack.c.bf16 %v2606_v8, %v2606_v8 }
 0x1ff   :  { %2906 = vmatmul.bf16.vlgmr.msrb.gmra.mxu2 %v2610_v19 }
 0x200   :  { %v2587_v18 = vpop.f32.mrf.mxu2  ;;  %v2550_v59 = vpop.f32.mrf.mxu0 }
 0x201   :  { %v2588_v1 = vadd.f32 %v2587_v18, %v6922_v17 }
 0x208   :  { %v2589_v38 = vpop.f32.mrf.mxu2 }
 0x218   :  { %v2600_v44 = vpop.f32.mrf.mxu0 }
 0x219   :  { %v2601_v21 = vadd.f32 %v2600_v44, %v2588_v1 }
 0x21b   :  { %v2607_v22 = vmax.f32 %v2601_v21, 0.0 }
 0x21d   :  { %v2611_v23 = vpack.c.bf16 %v2607_v22, %v2607_v22 }
 0x21f   :  { %2919 = vmatmul.bf16.vlgmr.msrb.gmra.mxu0 %v2611_v23 }
 0x220   :  { %v2602_v20 = vpop.f32.mrf.mxu0 }
 0x262   :  { %v2881_v4 = vpop.f32.mrf.mxu3 }
 0x263   :  { %v2882_v34 = vadd.f32 %v4726_v25, %v2881_v4 }
 0x26a   :  { %v2883_v24 = vpop.f32.mrf.mxu3 }
 0x26c   :  { %v2894_v26 = vpop.f32.mrf.mxu1 }
 0x26d   :  { %v2895_v11 = vadd.f32 %v2894_v26, %v2882_v34 }
 0x274   :  { %v2896_v29 = vpop.f32.mrf.mxu1 }
 0x282   :  { %v2907_v30 = vpop.f32.mrf.mxu2 }
 0x283   :  { %v2908_v35 = vadd.f32 %v2907_v30, %v2895_v11 }
 0x28a   :  { %v2909_v31 = vpop.f32.mrf.mxu2 }
 0x29c   :  { %v2920_v36 = vpop.f32.mrf.mxu0 }
 0x29d   :  { %v2921_v40 = vadd.f32 %v2920_v36, %v2908_v35 }
 0x29f   :  { %2924 = vst [vmem:[#allocation2] sm:$0x3] %v2921_v40 }
 0x2a0   :  { %2935 = dma.vmem_to_hbm [thread:$0]  %s2931_s9, 32, %s2933_s11, [#allocation3]  }
 0x2a4   :  { %v2922_v28 = vpop.f32.mrf.mxu0 }
 0x2a5   :  { %4751 = dma.done.wait [#allocation3], 32  }
 0x2a6   :  { %4752 = vsyncadd [#allocation3], 4294967264 }
 0x2a7   :  { %2940 = vsyncpa [#allocation3], 1 }

</bundles_post_ra>
